<compile_context>
chip_gen: v7x
topology: tpu7x:2x2x1
jax: 0.10.0
libtpu: 0.0.40
codegen_flags: <defaults>
</compile_context>

<pallas_src>
import functools

import jax
import jax.numpy as jnp
from jax import lax
from jax.experimental import pallas as pl
from jax.experimental.pallas import tpu as pltpu

SUBLANE = 8


# ----------------------------------------------------------------------------
# Helpers
# ----------------------------------------------------------------------------
def _round_up(n, m):
    return ((n + m - 1) // m) * m


def _pick_batch_tile(batch, requested):
    if requested is not None:
        return max(SUBLANE, _round_up(int(requested), SUBLANE))
    # >= 2 tiles when possible (v7x megacore shards the "parallel" axis),
    # capped at 2048 rows (per-row work is tiny; big tiles amortize the
    # ~0.35 us per-grid-step overhead; VMEM stays < 1 MiB).
    return min(2048, _round_up(max(pl.cdiv(batch, 2), SUBLANE), SUBLANE))


def _pick_chunk(tb):
    """Largest multiple-of-8 divisor of tb that is <= 256."""
    if tb <= 256:
        return tb
    for c in range(256, SUBLANE - 1, -SUBLANE):
        if tb % c == 0:
            return c
    return tb


# ----------------------------------------------------------------------------
# Kernel: fused 3-layer MLP   x -> Linear -> ReLU -> Linear -> ReLU -> Linear
# Weights/biases are resident in VMEM (constant index_map); each grid step
# streams one unpadded batch tile of x in and one unpadded output tile out.
# Matmuls accumulate in f32 on the MXU; bias-add / ReLU epilogues are f32 VPU.
# ----------------------------------------------------------------------------
def _decoder_mlp_kernel(x_ref, w1_ref, b1_ref, w2_ref, b2_ref, w3_ref, b3_ref,
                        out_ref, *, chunk, unroll, precision):
    # Hoist resident loads / bias broadcasts out of the per-chunk loop.
    w1 = w1_ref[...]
    b1 = b1_ref[...]
    w2 = w2_ref[...]
    b2 = b2_ref[...]
    w3 = w3_ref[...]
    b3 = b3_ref[...]

    def mlp(x):
        h = jnp.dot(x, w1, preferred_element_type=jnp.float32,
                    precision=precision)
        h = jnp.maximum(h + b1, 0.0)
        h = jnp.dot(h.astype(w2.dtype), w2,
                    preferred_element_type=jnp.float32, precision=precision)
        h = jnp.maximum(h + b2, 0.0)
        h = jnp.dot(h.astype(w3.dtype), w3,
                    preferred_element_type=jnp.float32, precision=precision)
        return (h + b3).astype(out_ref.dtype)

    tb = x_ref.shape[0]
    if chunk >= tb:
        out_ref[...] = mlp(x_ref[...])
    else:
        n_chunks = tb // chunk

        def body(c, carry):
            r = pl.multiple_of(c * chunk, chunk)
            out_ref[pl.ds(r, chunk), :] = mlp(x_ref[pl.ds(r, chunk), :])
            return carry

        lax.fori_loop(0, n_chunks, body, 0, unroll=unroll)


# ----------------------------------------------------------------------------
# Wrappers
# ----------------------------------------------------------------------------
def _decoder_forward_xla(x, params):
    """Plain-XLA path (also the correctness reference)."""
    p = lax.Precision.HIGHEST
    h = jnp.maximum(jnp.dot(x, params["w1"], precision=p) + params["b1"], 0.0)
    h = jnp.maximum(jnp.dot(h, params["w2"], precision=p) + params["b2"], 0.0)
    h = jnp.dot(h, params["w3"], precision=p) + params["b3"]
    return h, params["sigma"]


def decoder_forward_ref(x, params):
    return _decoder_forward_xla(x, params)


def decoder_forward(x, params, *, batch_tile=None, operand_dtype=jnp.float32,
                    precision=lax.Precision.HIGHEST, min_pallas_batch=1024,
                    force_pallas=False):
    """Decoder forward: returns (seq(x), sigma).

    Args:
      x: (batch, embedding_dim) float32.
      params: dict with w{1,2,3} of shape (in, out), b{1,2,3}, sigma.
      batch_tile: rows per grid step (default: auto, <=2048, >=2 tiles).
      operand_dtype: jnp.float32 (exact) or jnp.bfloat16 (halves the dominant
        streamed bytes, single native MXU pass on v6e/v7x; f32 accumulation
        and f32 bias/ReLU epilogues kept; ~1e-3 error).
      precision: matmul precision for the f32 path.  HIGHEST matches the f32
        reference; use lax.Precision.HIGH on v5e (halves MXU passes).
      min_pallas_batch: below this, fall back to plain XLA (kernel launch +
        per-step overhead dominates tiny problems).
      force_pallas: always take the Pallas path (used for testing).
    """
    B, E = x.shape
    H0 = params["w1"].shape[1]
    H1 = params["w2"].shape[1]
    D = params["w3"].shape[1]

    if not force_pallas and B < min_pallas_batch:
        return _decoder_forward_xla(x, params)

    operand_dtype = jnp.dtype(operand_dtype)
    is_bf16 = operand_dtype == jnp.dtype(jnp.bfloat16)
    mat_precision = None if is_bf16 else precision

    x_in = x.astype(operand_dtype)
    w1 = params["w1"].astype(operand_dtype)
    w2 = params["w2"].astype(operand_dtype)
    w3 = params["w3"].astype(operand_dtype)
    # Biases stay f32 (applied after f32 accumulation).
    b1 = params["b1"].astype(jnp.float32).reshape(1, H0)
    b2 = params["b2"].astype(jnp.float32).reshape(1, H1)
    b3 = params["b3"].astype(jnp.float32).reshape(1, D)

    # ---- batch tiling: cdiv grid, partial last block handled by Pallas -----
    tb = _pick_batch_tile(B, batch_tile)
    grid = (pl.cdiv(B, tb),)
    chunk = _pick_chunk(tb)
    n_chunks = max(1, tb // chunk)
    unroll = True if n_chunks <= 4 else 2   # cap unroll for big tiles

    kernel = functools.partial(_decoder_mlp_kernel, chunk=chunk,
                               unroll=unroll, precision=mat_precision)

    # ---- VMEM budget: double-buffered streams + resident weights -----------
    osize = operand_dtype.itemsize
    stream_bytes = 2 * (tb * E * osize + tb * D * 4)
    weight_bytes = 2 * ((E * H0 + H0 * H1 + H1 * D) * osize
                        + (H0 + H1 + D) * 4)
    vmem_limit = int(min(48 * 1024 * 1024,
                         max(stream_bytes + weight_bytes + (4 << 20),
                             8 * 1024 * 1024)))

    # Advisory cost estimate (include f32-emulation pass multiplier).
    pass_factor = 1
    if not is_bf16:
        pass_factor = {lax.Precision.HIGHEST: 6,
                       lax.Precision.HIGH: 3}.get(precision, 1)
    flops = 2 * B * (E * H0 + H0 * H1 + H1 * D) * pass_factor
    bytes_accessed = (B * E * osize + B * D * 4
                      + (E * H0 + H0 * H1 + H1 * D) * osize
                      + (H0 + H1 + D) * 4)

    out = pl.pallas_call(
        kernel,
        out_shape=jax.ShapeDtypeStruct((B, D), jnp.float32),
        grid_spec=pltpu.PrefetchScalarGridSpec(
            num_scalar_prefetch=0,
            grid=grid,
            in_specs=[
                pl.BlockSpec((tb, E), lambda i: (i, 0)),    # streamed x tile
                # Constant index_map: weights/biases resident across steps.
                pl.BlockSpec((E, H0), lambda i: (0, 0)),    # w1
                pl.BlockSpec((1, H0), lambda i: (0, 0)),    # b1
                pl.BlockSpec((H0, H1), lambda i: (0, 0)),   # w2
                pl.BlockSpec((1, H1), lambda i: (0, 0)),    # b2
                pl.BlockSpec((H1, D), lambda i: (0, 0)),    # w3
                pl.BlockSpec((1, D), lambda i: (0, 0)),     # b3
            ],
            out_specs=pl.BlockSpec((tb, D), lambda i: (i, 0)),
        ),
        compiler_params=pltpu.CompilerParams(
            dimension_semantics=("parallel",),
            vmem_limit_bytes=vmem_limit),
        cost_estimate=pl.CostEstimate(flops=flops, transcendentals=0,
                                      bytes_accessed=bytes_accessed),
    )(x_in, w1, b1, w2, b2, w3, b3)

    # sigma is a learned parameter returned verbatim (no compute).
    return out, params["sigma"]


# ----------------------------------------------------------------------------
# Deterministic parameter initialization (PyTorch Linear-style uniform init).
# ----------------------------------------------------------------------------
def init_decoder_params(key, embedding_dim, decompress_dims, data_dim):
    dims = [embedding_dim] + list(decompress_dims) + [data_dim]
    params = {}
    for idx in range(len(dims) - 1):
        fan_in, fan_out = dims[idx], dims[idx + 1]
        key, kw, kb = jax.random.split(key, 3)
        bound = 1.0 / jnp.sqrt(jnp.float32(fan_in))
        params[f"w{idx + 1}"] = jax.random.uniform(
            kw, (fan_in, fan_out), jnp.float32, -bound, bound)
        params[f"b{idx + 1}"] = jax.random.uniform(
            kb, (fan_out,), jnp.float32, -bound, bound)
    params["sigma"] = jnp.ones((data_dim,), jnp.float32) * 0.1
    return params


if __name__ == "__main__":
    # Shapes consistent with the module: embedding_dim=32, decompress_dims=(64, 64),
    # data_dim=16.
    embedding_dim = 32
    decompress_dims = (64, 64)
    data_dim = 16

    key = jax.random.PRNGKey(0)
    key, kx1, kx2 = jax.random.split(key, 3)
    params = init_decoder_params(key, embedding_dim, decompress_dims, data_dim)

    # 1) Pallas path: batch splits into two 128-row tiles, all unpadded streams.
    batch = 256
    x = jax.random.normal(kx1, (batch, embedding_dim), jnp.float32)
    out, sigma = decoder_forward(x, params, force_pallas=True)
    out = jax.block_until_ready(out)
    sigma = jax.block_until_ready(sigma)
    ref_out, ref_sigma = decoder_forward_ref(x, params)
    assert out.shape == (batch, data_dim)
    assert sigma.shape == (data_dim,)
    assert jnp.allclose(out, ref_out, atol=1e-5, rtol=1e-5)
    assert jnp.allclose(sigma, ref_sigma)

    # 2) Non-divisible batch exercises the cdiv grid / masked partial block.
    batch2 = 100
    x2 = jax.random.normal(kx2, (batch2, embedding_dim), jnp.float32)
    out2, _ = decoder_forward(x2, params, force_pallas=True)
    out2 = jax.block_until_ready(out2)
    ref2, _ = decoder_forward_ref(x2, params)
    assert out2.shape == (batch2, data_dim)
    assert jnp.allclose(out2, ref2, atol=1e-5, rtol=1e-5)

    # 3) bf16-operand path (v6e/v7x knob): relaxed tolerance, f32 accumulation.
    out_bf16, _ = decoder_forward(x, params, force_pallas=True,
                                  operand_dtype=jnp.bfloat16)
    out_bf16 = jax.block_until_ready(out_bf16)
    assert jnp.allclose(out_bf16, ref_out, atol=2e-2, rtol=2e-2)

    # 4) Tiny batch takes the plain-XLA fallback (kernel overhead dominates).
    out4, sigma4 = decoder_forward(x[:8], params)
    out4 = jax.block_until_ready(out4)
    assert jnp.allclose(out4, ref_out[:8], atol=1e-5, rtol=1e-5)
    assert jnp.allclose(sigma4, ref_sigma)

    print("KERNEL_OK")
</pallas_src>

<mosaic_0001>
module attributes {stable_mosaic.version = 11 : i64} {
  func.func @_decoder_mlp_kernel(%arg0: i32, %arg1: memref<128x32xf32, #tpu.memory_space<vmem>>, %arg2: memref<32x64xf32, #tpu.memory_space<vmem>>, %arg3: memref<1x64xf32, #tpu.memory_space<vmem>>, %arg4: memref<64x64xf32, #tpu.memory_space<vmem>>, %arg5: memref<1x64xf32, #tpu.memory_space<vmem>>, %arg6: memref<64x16xf32, #tpu.memory_space<vmem>>, %arg7: memref<1x16xf32, #tpu.memory_space<vmem>>, %arg8: memref<128x16xf32, #tpu.memory_space<vmem>>) attributes {dimension_semantics = [#tpu.dimension_semantics<parallel>], iteration_bounds = array<i64: 2>, scalar_prefetch = 0 : i64, scratch_operands = 0 : i64, tpu.core_type = #tpu.core_type<tc>, window_params = [{transform_indices = @transform_0, window_bounds = array<i64: 128, 32>}, {pipeline_mode = #tpu.pipeline_mode<synchronous>, transform_indices = @transform_1, window_bounds = array<i64: 32, 64>}, {pipeline_mode = #tpu.pipeline_mode<synchronous>, transform_indices = @transform_2, window_bounds = array<i64: 1, 64>}, {pipeline_mode = #tpu.pipeline_mode<synchronous>, transform_indices = @transform_3, window_bounds = array<i64: 64, 64>}, {pipeline_mode = #tpu.pipeline_mode<synchronous>, transform_indices = @transform_4, window_bounds = array<i64: 1, 64>}, {pipeline_mode = #tpu.pipeline_mode<synchronous>, transform_indices = @transform_5, window_bounds = array<i64: 64, 16>}, {pipeline_mode = #tpu.pipeline_mode<synchronous>, transform_indices = @transform_6, window_bounds = array<i64: 1, 16>}, {transform_indices = @transform_7, window_bounds = array<i64: 128, 16>}]} {
    %c0 = arith.constant 0 : index
    %c0_0 = arith.constant 0 : index
    %0 = vector.load %arg2[%c0, %c0_0] : memref<32x64xf32, #tpu.memory_space<vmem>>, vector<32x64xf32>
    %c0_1 = arith.constant 0 : index
    %c0_2 = arith.constant 0 : index
    %1 = vector.load %arg3[%c0_1, %c0_2] : memref<1x64xf32, #tpu.memory_space<vmem>>, vector<1x64xf32>
    %c0_3 = arith.constant 0 : index
    %c0_4 = arith.constant 0 : index
    %2 = vector.load %arg4[%c0_3, %c0_4] : memref<64x64xf32, #tpu.memory_space<vmem>>, vector<64x64xf32>
    %c0_5 = arith.constant 0 : index
    %c0_6 = arith.constant 0 : index
    %3 = vector.load %arg5[%c0_5, %c0_6] : memref<1x64xf32, #tpu.memory_space<vmem>>, vector<1x64xf32>
    %c0_7 = arith.constant 0 : index
    %c0_8 = arith.constant 0 : index
    %4 = vector.load %arg6[%c0_7, %c0_8] : memref<64x16xf32, #tpu.memory_space<vmem>>, vector<64x16xf32>
    %c0_9 = arith.constant 0 : index
    %c0_10 = arith.constant 0 : index
    %5 = vector.load %arg7[%c0_9, %c0_10] : memref<1x16xf32, #tpu.memory_space<vmem>>, vector<1x16xf32>
    %c0_11 = arith.constant 0 : index
    %c0_12 = arith.constant 0 : index
    %6 = vector.load %arg1[%c0_11, %c0_12] : memref<128x32xf32, #tpu.memory_space<vmem>>, vector<128x32xf32>
    %cst = arith.constant dense<0.000000e+00> : vector<128x64xf32>
    %7 = tpu.matmul %6, %0, %cst {dimension_numbers = #tpu.dot_dimension_numbers<[1], [0], [0], [1], [0, 0, 1, 1], [], []>, precision = #tpu.contract_precision<fp32>} : vector<128x32xf32>, vector<32x64xf32>, vector<128x64xf32> -> vector<128x64xf32>
    %8 = vector.broadcast %1 : vector<1x64xf32> to vector<128x64xf32>
    %9 = arith.addf %7, %8 : vector<128x64xf32>
    %cst_13 = arith.constant 0.000000e+00 : f32
    %10 = vector.broadcast %cst_13 : f32 to vector<128x64xf32>
    %11 = arith.maximumf %9, %10 : vector<128x64xf32>
    %cst_14 = arith.constant dense<0.000000e+00> : vector<128x64xf32>
    %12 = tpu.matmul %11, %2, %cst_14 {dimension_numbers = #tpu.dot_dimension_numbers<[1], [0], [0], [1], [0, 0, 1, 1], [], []>, precision = #tpu.contract_precision<fp32>} : vector<128x64xf32>, vector<64x64xf32>, vector<128x64xf32> -> vector<128x64xf32>
    %13 = vector.broadcast %3 : vector<1x64xf32> to vector<128x64xf32>
    %14 = arith.addf %12, %13 : vector<128x64xf32>
    %cst_15 = arith.constant 0.000000e+00 : f32
    %15 = vector.broadcast %cst_15 : f32 to vector<128x64xf32>
    %16 = arith.maximumf %14, %15 : vector<128x64xf32>
    %cst_16 = arith.constant dense<0.000000e+00> : vector<128x16xf32>
    %17 = tpu.matmul %16, %4, %cst_16 {dimension_numbers = #tpu.dot_dimension_numbers<[1], [0], [0], [1], [0, 0, 1, 1], [], []>, precision = #tpu.contract_precision<fp32>} : vector<128x64xf32>, vector<64x16xf32>, vector<128x16xf32> -> vector<128x16xf32>
    %18 = vector.broadcast %5 : vector<1x16xf32> to vector<128x16xf32>
    %19 = arith.addf %17, %18 : vector<128x16xf32>
    %c0_17 = arith.constant 0 : index
    %c0_18 = arith.constant 0 : index
    %20 = vector.load %arg8[%c0_17, %c0_18] : memref<128x16xf32, #tpu.memory_space<vmem>>, vector<128x16xf32>
    tpu.vector_store %arg8[%c0_17, %c0_18], %19 {strides = array<i32>} : memref<128x16xf32, #tpu.memory_space<vmem>>, vector<128x16xf32>,
    return
  }
  func.func @transform_0(%arg0: i32) -> (i32, i32) {
    %c0_i32 = arith.constant 0 : i32
    %c0_i32_0 = arith.constant 0 : i32
    return %arg0, %c0_i32 : i32, i32
  }
  func.func @transform_1(%arg0: i32) -> (i32, i32) {
    %c0_i32 = arith.constant 0 : i32
    %c0_i32_0 = arith.constant 0 : i32
    %c0_i32_1 = arith.constant 0 : i32
    return %c0_i32, %c0_i32_0 : i32, i32
  }
  func.func @transform_2(%arg0: i32) -> (i32, i32) {
    %c0_i32 = arith.constant 0 : i32
    %c0_i32_0 = arith.constant 0 : i32
    %c0_i32_1 = arith.constant 0 : i32
    return %c0_i32, %c0_i32_0 : i32, i32
  }
  func.func @transform_3(%arg0: i32) -> (i32, i32) {
    %c0_i32 = arith.constant 0 : i32
    %c0_i32_0 = arith.constant 0 : i32
    %c0_i32_1 = arith.constant 0 : i32
    return %c0_i32, %c0_i32_0 : i32, i32
  }
  func.func @transform_4(%arg0: i32) -> (i32, i32) {
    %c0_i32 = arith.constant 0 : i32
    %c0_i32_0 = arith.constant 0 : i32
    %c0_i32_1 = arith.constant 0 : i32
    return %c0_i32, %c0_i32_0 : i32, i32
  }
  func.func @transform_5(%arg0: i32) -> (i32, i32) {
    %c0_i32 = arith.constant 0 : i32
    %c0_i32_0 = arith.constant 0 : i32
    %c0_i32_1 = arith.constant 0 : i32
    return %c0_i32, %c0_i32_0 : i32, i32
  }
  func.func @transform_6(%arg0: i32) -> (i32, i32) {
    %c0_i32 = arith.constant 0 : i32
    %c0_i32_0 = arith.constant 0 : i32
    %c0_i32_1 = arith.constant 0 : i32
    return %c0_i32, %c0_i32_0 : i32, i32
  }
  func.func @transform_7(%arg0: i32) -> (i32, i32) {
    %c0_i32 = arith.constant 0 : i32
    %c0_i32_0 = arith.constant 0 : i32
    return %arg0, %c0_i32 : i32, i32
  }
}

</mosaic_0001>

<bundles_post_ra>
// kernel: tpu_custom_call.1
= control target key start
LH: loop header
LB: loop body
LE: loop exit
PB: predicated region body
PF: predicated region fallthrough
CT: control target
= control target key end

     0   :  { %s5762_s24 = smov 0   ;;  %s7022_s0 = inlined_call_operand.vmem [shape: f32[256,32], index: 0, kind: input, shape index: {}]   ;;  %s7023_s1 = inlined_call_operand.vmem [shape: f32[32,64], index: 1, kind: input, shape index: {}]   ;;  %s7024_s2 = inlined_call_operand.vmem [shape: f32[1,64], index: 2, kind: input, shape index: {}]   ;;  %s7025_s3 = inlined_call_operand.vmem [shape: f32[64,64], index: 3, kind: input, shape index: {}]   ;;  %s7026_s4 = inlined_call_operand.vmem [shape: f32[1,64], index: 4, kind: input, shape index: {}]   ;;  %s7027_s5 = inlined_call_operand.vmem [shape: f32[64,16], index: 5, kind: input, shape index: {}]   ;;  %s7028_s6 = inlined_call_operand.vmem [shape: f32[1,16], index: 6, kind: input, shape index: {}]   ;;  %s7029_s7 = inlined_call_operand.vmem [shape: f32[256,16], index: 7, kind: output, shape index: {}]  }
   0x1 LB: > { %s4084_s25 = sadd.s32 4294967295, %s5720_s24   ;;  %p4088_p0 = scmp.ge.s32.totalorder %s5720_s24, 1  ;;  %s5720_s24 = sphi %s5762_s24, %s17_s24  }
   0x2   : > { %p238_p1 = scmp.lt.s32.totalorder %s5720_s24, 3 }
   0x4   : > { %p239_p2 = pnand %p4088_p0, %p238_p1 }
   0x5   : > { %v282_v0 = vld [vmem:[%s7023_s1] sm:$0xff] (!%p239_p2)  ;;  %v283_v1 = vld [vmem:[%s7023_s1 + $0x8] sm:$0xff] (!%p239_p2)  ;;  %v284_v2 = vld [vmem:[%s7023_s1 + $0x10] sm:$0xff] (!%p239_p2)  ;;  %s4089_s9 = sshll.u32 (!%p239_p2), %s4084_s25, 4  ;;  %vm327_vm0 = vcmask (!%p239_p2), 261120   ;;  %vm1528_vm1 = vcmask (!%p239_p2), 523264  }
   0x6   : > { %242 = sbr.rel (%p239_p2) target bundleno = 1122 (0x462), region = 48  ;;  %v377_v3 = vand.u32 (!%p239_p2), 4294901760, %v282_v0  ;;  %v380_v4 = vand.u32 (!%p239_p2), 4294901760, %v283_v1  ;;  %v285_v5 = vld [vmem:[%s7023_s1 + $0x18] sm:$0xff] (!%p239_p2)  ;;  %v383_v6 = vand.u32 (!%p239_p2), 4294901760, %v284_v2  ;;  %p271_p3 = scmp.lt.s32.totalorder (!%p239_p2), %s4089_s9, 31 }
   0x7   : > { %v386_v7 = vand.u32 (!%p239_p2), 4294901760, %v285_v5  ;;  %vm4011_vm2 = vcmask (!%p239_p2), 130048  }
   0x8   : > { %v5782_v8 = vpack.c.bf16 (!%p239_p2), %v380_v4, %v377_v3  ;;  %v5786_v9 = vsub.f32 (!%p239_p2), %v282_v0, %v377_v3  ;;  %v5788_v10 = vsub.f32 (!%p239_p2), %v283_v1, %v380_v4  ;;  %v5790_v11 = vsub.f32 (!%p239_p2), %v284_v2, %v383_v6 }
   0x9   : > { %v5792_v12 = vpack.c.bf16 (!%p239_p2), %v386_v7, %v383_v6  ;;  %v5794_v13 = vsub.f32 (!%p239_p2), %v285_v5, %v386_v7 }
   0xa   : > { %5203 = vmatprep.subr.bf16.mxu0 (!%p239_p2), %v5782_v8  ;;  %5179 = vmatprep.subr.bf16.mxu1 (!%p239_p2), %v5782_v8  ;;  %v608_v14 = vand.u32 (!%p239_p2), 4294901760, %v5786_v9  ;;  %v615_v15 = vand.u32 (!%p239_p2), 4294901760, %v5788_v10  ;;  %v622_v16 = vand.u32 (!%p239_p2), 4294901760, %v5790_v11 }
   0xb   : > { %5205 = vmatpush3.bf16.msra.mxu0 (!%p239_p2), %v5782_v8  ;;  %5181 = vmatpush3.bf16.msra.mxu1 (!%p239_p2), %v5782_v8  ;;  %v629_v23 = vand.u32 (!%p239_p2), 4294901760, %v5794_v13 }
   0xc   : > { %5207 = vmatprep.subr.bf16.mxu0 (!%p239_p2), %v5792_v12  ;;  %5183 = vmatprep.subr.bf16.mxu1 (!%p239_p2), %v5792_v12  ;;  %v609_v19 = vsub.f32 (!%p239_p2), %v5786_v9, %v608_v14  ;;  %v616_v20 = vsub.f32 (!%p239_p2), %v5788_v10, %v615_v15  ;;  %v5210_v22 = vpack.c.bf16 (!%p239_p2), %v615_v15, %v608_v14 }
   0xd   : > { %s7101_s9 = smov (!%p271_p3, %s4089_s9), 31  ;;  %v5828_v30 = vsub.f32 %v5790_v11, %v622_v16 }
   0xe   : > { %s4090_s12 = sshll.u32 %s7101_s9, 3  ;;  %v610_v33 = vand.u32 4294901760, %v609_v19  ;;  %v617_v34 = vand.u32 4294901760, %v616_v20 }
   0xf   : > { %s5809_s15 = scalar_lea.vmem %s7022_s0, %s4090_s12  ;;  %5209 = vmatpush3.bf16.msra.mxu0 %v5792_v12  ;;  %5185 = vmatpush3.bf16.msra.mxu1 %v5792_v12  ;;  %s6985_s16 = scalar_lea.vmem %s7029_s7, %s4090_s12 }
  0x10   : > { %v305_v17 = vld [vmem:[%s5809_s15] sm:$0xff]  ;;  %v306_v18 = vld [vmem:[%s5809_s15 + $0x8] sm:$0xff]  ;;  %v307_v21 = vld [vmem:[%s5809_s15 + $0x10] sm:$0xff]  ;;  %v5186_v42 = vpack.c.bf16 %v617_v34, %v610_v33  ;;  %5211 = vmatprep.subr.bf16.mxu0 %v5210_v22  ;;  %v624_v34 = vand.u32 4294901760, %v5828_v30 }
  0x11   : > { %v329_v24 = vsel %vm327_vm0, %v305_v17, 0  ;;  %v332_v25 = vsel %vm327_vm0, %v306_v18, 0  ;;  %v335_v26 = vsel %vm327_vm0, %v307_v21, 0  ;;  %v308_v27 = vld [vmem:[%s5809_s15 + $0x18] sm:$0xff]  ;;  %v309_v28 = vld [vmem:[%s5809_s15 + $0x20] sm:$0xff]  ;;  %v310_v29 = vld [vmem:[%s5809_s15 + $0x28] sm:$0xff] }
  0x12   : > { %v5830_v31 = vand.u32 4294901760, %v329_v24  ;;  %v5832_v32 = vand.u32 4294901760, %v332_v25  ;;  %v311_v35 = vld [vmem:[%s5809_s15 + $0x30] sm:$0xff]  ;;  %v5837_v36 = vand.u32 4294901760, %v335_v26  ;;  %v338_v37 = vsel %vm327_vm0, %v308_v27, 0  ;;  %v312_v44 = vld [vmem:[%s5809_s15 + $0x38] sm:$0xff]  ;;  %5187 = vmatprep.subr.bf16.mxu1 %v5186_v42 }
  0x13   : > { %v341_v38 = vsel %vm327_vm0, %v309_v28, 0  ;;  %v344_v39 = vsel %vm327_vm0, %v310_v29, 0  ;;  %v5848_v43 = vand.u32 4294901760, %v338_v37  ;;  %v347_v48 = vsel %vm327_vm0, %v311_v35, 0  ;;  %v313_v1 = vld [vmem:[%s5809_s15 + $0x40] sm:$0xff]  ;;  %v314_v2 = vld [vmem:[%s5809_s15 + $0x48] sm:$0xff] }
  0x14   : > { %v5843_v40 = vsub.f32 %v329_v24, %v5830_v31  ;;  %v5846_v41 = vsub.f32 %v332_v25, %v5832_v32  ;;  %v5852_v45 = vsub.f32 %v335_v26, %v5837_v36  ;;  %v5854_v46 = vand.u32 4294901760, %v341_v38  ;;  %v315_v21 = vld [vmem:[%s5809_s15 + $0x50] sm:$0xff] }
  0x15   : > { %v5856_v47 = vand.u32 4294901760, %v344_v39  ;;  %v5862_v51 = vsub.f32 %v338_v37, %v5848_v43  ;;  %v5864_v52 = vand.u32 4294901760, %v347_v48  ;;  %v350_v56 = vsel %vm327_vm0, %v312_v44, 0 }
  0x16   : > { %v447_v49 = vand.u32 4294901760, %v5843_v40  ;;  %v457_v50 = vand.u32 4294901760, %v5846_v41  ;;  %v467_v53 = vand.u32 4294901760, %v5852_v45  ;;  %v5868_v54 = vsub.f32 %v341_v38, %v5854_v46 }
  0x17   : > { %v5871_v55 = vsub.f32 %v344_v39, %v5856_v47  ;;  %v477_v59 = vand.u32 4294901760, %v5862_v51  ;;  %v5878_v60 = vsub.f32 %v347_v48, %v5864_v52  ;;  %v5883_v0 = vand.u32 4294901760, %v350_v56 }
  0x18   : > { %4610 = vmatprep.mubr.f32.mxu0 %v447_v49  ;;  %v448_v57 = vsub.f32 %v5843_v40, %v447_v49  ;;  %v458_v58 = vsub.f32 %v5846_v41, %v457_v50  ;;  %v468_v61 = vsub.f32 %v5852_v45, %v467_v53  ;;  %v487_v62 = vand.u32 4294901760, %v5868_v54  ;;  %v318_v49 = vld [vmem:[%s5809_s15 + $0x68] sm:$0xff] }
  0x19   : > { %4611 = vmatmul.mubr.f32.vlgmr.msra.gmra.mrb[0].mxu0 %v457_v50  ;;  %v497_v63 = vand.u32 4294901760, %v5871_v55  ;;  %v478_v5 = vsub.f32 %v5862_v51, %v477_v59  ;;  %v507_v6 = vand.u32 4294901760, %v5878_v60  ;;  %v5892_v17 = vsub.f32 %v350_v56, %v5883_v0  ;;  %v319_v50 = vld [vmem:[%s5809_s15 + $0x70] sm:$0xff] }
  0x1a   : > { %v449_v3 = vand.u32 4294901760, %v448_v57  ;;  %4613 = vmatprep.mubr.f32.mxu0 %v467_v53  ;;  %v459_v4 = vand.u32 4294901760, %v458_v58  ;;  %5213 = vmatpush3.bf16.msra.mxu0 %v5210_v22  ;;  %v469_v7 = vand.u32 4294901760, %v468_v61  ;;  %v488_v14 = vsub.f32 %v5868_v54, %v487_v62  ;;  %v316_v22 = vld [vmem:[%s5809_s15 + $0x58] sm:$0xff] }
  0x1b   : > { %v498_v15 = vsub.f32 %v5871_v55, %v497_v63  ;;  %v479_v18 = vand.u32 4294901760, %v478_v5  ;;  %v353_v19 = vsel %vm327_vm0, %v313_v1, 0  ;;  %v356_v20 = vsel %vm327_vm0, %v314_v2, 0  ;;  %v320_v1 = vld [vmem:[%s5809_s15 + $0x78] sm:$0xff] }
  0x1c   : > { %4514 = vmatprep.mubr.f32.mxu1 %v449_v3  ;;  %v5900_v24 = vpack.c.bf16 %v5788_v10, %v5786_v9  ;;  %v489_v25 = vand.u32 4294901760, %v488_v14  ;;  %v517_v26 = vand.u32 4294901760, %v5892_v17  ;;  %v508_v27 = vsub.f32 %v5878_v60, %v507_v6  ;;  %v317_v10 = vld [vmem:[%s5809_s15 + $0x60] sm:$0xff] }
  0x1d   : > { %4515 = vmatmul.mubr.f32.vlgmr.msra.gmra.mrb[0].mxu1 %v459_v4  ;;  %4614 = vmatmul.mubr.f32.gmra.mrb[2].mxu0 %v477_v59  ;;  %v5904_v28 = vand.u32 4294901760, %v353_v19  ;;  %v499_v29 = vand.u32 4294901760, %v498_v15  ;;  %v5906_v33 = vand.u32 4294901760, %v356_v20  ;;  %v630_v9 = vsub.f32 %v5794_v13, %v629_v23 }
  0x1e   : > { %5189 = vmatpush3.bf16.msra.mxu1 %v5186_v42  ;;  %4517 = vmatprep.mubr.f32.mxu1 %v469_v7  ;;  %v518_v37 = vsub.f32 %v5892_v17, %v517_v26  ;;  %v359_v38 = vsel %vm327_vm0, %v315_v21, 0  ;;  %v362_v39 = vsel %vm327_vm0, %v316_v22, 0  ;;  %v509_v53 = vand.u32 4294901760, %v508_v27 }
  0x1f   : > { %4616 = vmatprep.mubr.f32.mxu0 %v487_v62  ;;  %v5914_v35 = vsub.f32 %v353_v19, %v5904_v28  ;;  %v5920_v42 = vsub.f32 %v356_v20, %v5906_v33  ;;  %v631_v44 = vand.u32 4294901760, %v630_v9  ;;  %v5922_v30 = vand.u32 4294901760, %v359_v38 }
  0x20   : > { %v5924_v48 = vand.u32 4294901760, %v362_v39  ;;  %v5214_v57 = vpack.c.bf16 %v629_v23, %v622_v16  ;;  %v365_v58 = vsel %vm327_vm0, %v317_v10, 0  ;;  %v368_v16 = vsel %vm327_vm0, %v318_v49, 0 }
  0x21   : > { %4518 = vmatmul.mubr.f32.gmra.mrb[2].mxu1 %v479_v18  ;;  %4617 = vmatmul.mubr.f32.gmra.mrb[4].mxu0 %v497_v63  ;;  %v527_v56 = vand.u32 4294901760, %v5914_v35  ;;  %v537_v59 = vand.u32 4294901760, %v5920_v42  ;;  %v5190_v61 = vpack.c.bf16 %v631_v44, %v624_v34  ;;  %v5936_v62 = vsub.f32 %v359_v38, %v5922_v30 }
  0x22   : > { %4520 = vmatprep.mubr.f32.mxu1 %v489_v25  ;;  %4619 = vmatprep.mubr.f32.mxu0 %v507_v6  ;;  %v5939_v63 = vsub.f32 %v362_v39, %v5924_v48  ;;  %v5943_v3 = vand.u32 4294901760, %v365_v58  ;;  %v371_v23 = vsel %vm327_vm0, %v319_v50, 0  ;;  %v519_v4 = vand.u32 4294901760, %v518_v37 }
  0x23   : > { %v528_v2 = vsub.f32 %v5914_v35, %v527_v56  ;;  %5215 = vmatprep.subr.bf16.mxu0 %v5214_v57  ;;  %5191 = vmatprep.subr.bf16.mxu1 %v5190_v61  ;;  %v547_v5 = vand.u32 4294901760, %v5936_v62  ;;  %v538_v6 = vsub.f32 %v5920_v42, %v537_v59  ;;  %v5949_v7 = vand.u32 4294901760, %v368_v16 }
  0x24   : > { %5217 = vmatpush3.bf16.msra.mxu0 %v5214_v57  ;;  %v557_v14 = vand.u32 4294901760, %v5939_v63  ;;  %v5953_v15 = vsub.f32 %v365_v58, %v5943_v3  ;;  %v5955_v18 = vand.u32 4294901760, %v371_v23  ;;  %v374_v19 = vsel %vm327_vm0, %v320_v1, 0  ;;  %5193 = vmatpush3.bf16.msra.mxu1 %v5190_v61  ;;  %v5986_v1 = vld [vmem:[%s7025_s3] sm:$0xff] }
  0x25   : > { %4521 = vmatmul.mubr.f32.gmra.mrb[4].mxu1 %v499_v29  ;;  %4620 = vmatmul.mubr.f32.gmra.mrb[6].mxu0 %v517_v26  ;;  %v529_v20 = vand.u32 4294901760, %v528_v2  ;;  %v548_v21 = vsub.f32 %v5936_v62, %v547_v5  ;;  %v5960_v22 = vsub.f32 %v368_v16, %v5949_v7  ;;  %v5966_v27 = vand.u32 4294901760, %v374_v19  ;;  %v5991_v2 = vld [vmem:[%s7025_s3 + $0x8] sm:$0xff] }
  0x26   : > { %4523 = vmatprep.mubr.f32.mxu1 %v509_v53  ;;  %4622 = vmatprep.mubr.f32.mxu0 %v527_v56  ;;  %v567_v25 = vand.u32 4294901760, %v5953_v15  ;;  %v5964_v26 = vsub.f32 %v371_v23, %v5955_v18  ;;  %v539_v29 = vand.u32 4294901760, %v538_v6  ;;  %v558_v34 = vsub.f32 %v5939_v63, %v557_v14 }
  0x27   : > { %5219 = vmatprep.subr.bf16.mxu0 %v5782_v8  ;;  %5195 = vmatprep.subr.bf16.mxu1 %v5900_v24  ;;  %v577_v9 = vand.u32 4294901760, %v5960_v22  ;;  %v5973_v10 = vsub.f32 %v374_v19, %v5966_v27  ;;  %v549_v37 = vand.u32 4294901760, %v548_v21  ;;  %v5198_v16 = vpack.c.bf16 %v5794_v13, %v5790_v11  ;;  %v6039_v11 = vld [vmem:[%s7025_s3 + $0x10] sm:$0xff] }
  0x28   : > { %v568_v38 = vsub.f32 %v5953_v15, %v567_v25  ;;  %v587_v39 = vand.u32 4294901760, %v5964_v26  ;;  %v559_v44 = vand.u32 4294901760, %v558_v34  ;;  %v1578_v23 = vand.u32 4294901760, %v5986_v1 }
  0x29   : > { %4524 = vmatmul.mubr.f32.gmra.mrb[6].mxu1 %v519_v4  ;;  %4623 = vmatmul.mubr.f32.gmra.mrb[8].mxu0 %v537_v59  ;;  %v578_v49 = vsub.f32 %v5960_v22, %v577_v9  ;;  %v597_v50 = vand.u32 4294901760, %v5973_v10  ;;  %v1581_v4 = vand.u32 4294901760, %v5991_v2  ;;  %v1584_v13 = vand.u32 4294901760, %v6039_v11 }
  0x2a   : > { %4526 = vmatprep.mubr.f32.mxu1 %v529_v20  ;;  %4625 = vmatprep.mubr.f32.mxu0 %v547_v5  ;;  %v569_v53 = vand.u32 4294901760, %v568_v38  ;;  %v588_v56 = vsub.f32 %v5964_v26, %v587_v39 }
  0x2b   : > { %v579_v57 = vand.u32 4294901760, %v578_v49  ;;  %v598_v58 = vsub.f32 %v5973_v10, %v597_v50 }
  0x2c   : > { %v589_v59 = vand.u32 4294901760, %v588_v56 }
  0x2d   : > { %4527 = vmatmul.mubr.f32.gmra.mrb[8].mxu1 %v539_v29  ;;  %4626 = vmatmul.mubr.f32.gmra.mrb[10].mxu0 %v557_v14  ;;  %v599_v61 = vand.u32 4294901760, %v598_v58 }
  0x2e   : > { %4529 = vmatprep.mubr.f32.mxu1 %v549_v37  ;;  %4628 = vmatprep.mubr.f32.mxu0 %v567_v25 }
  0x31   : > { %4530 = vmatmul.mubr.f32.gmra.mrb[10].mxu1 %v559_v44  ;;  %4629 = vmatmul.mubr.f32.gmra.mrb[12].mxu0 %v577_v9  ;;  %v6185_v44 = vld [vmem:[%s7024_s2] ss:$0 sm:$0xff] }
  0x32   : > { %4532 = vmatprep.mubr.f32.mxu1 %v569_v53  ;;  %4631 = vmatprep.mubr.f32.mxu0 %v587_v39 }
  0x35   : > { %4533 = vmatmul.mubr.f32.gmra.mrb[12].mxu1 %v579_v57  ;;  %4632 = vmatmul.mubr.f32.gmra.mrb[14].mxu0 %v597_v50 }
  0x36   : > { %4535 = vmatprep.mubr.f32.mxu1 %v589_v59  ;;  %4642 = vmatprep.mubr.f32.mxu0 %v5830_v31 }
  0x39   : > { %4536 = vmatmul.mubr.f32.gmra.mrb[14].mxu1 %v599_v61  ;;  %4643 = vmatmul.mubr.f32.vlgmr.msra.gmra.mrb[0].mxu0 %v5832_v32 }
  0x3a   : > { %4546 = vmatprep.mubr.f32.mxu1 %v5830_v31  ;;  %4645 = vmatprep.mubr.f32.mxu0 %v5837_v36 }
  0x3b   : > { %5221 = vmatpush3.bf16.msra.mxu0 %v5782_v8  ;;  %v6011_v8 = vpack.c.bf16 %v1581_v4, %v1578_v23 }
  0x3c   : > { %5223 = vmatprep.subr.bf16.mxu0 %v5792_v12 }
  0x3d   : > { %4547 = vmatmul.mubr.f32.vlgmr.msra.gmra.mrb[0].mxu1 %v5832_v32  ;;  %4646 = vmatmul.mubr.f32.gmra.mrb[2].mxu0 %v5848_v43 }
  0x3e   : > { %5197 = vmatpush3.bf16.msra.mxu1 %v5900_v24  ;;  %4549 = vmatprep.mubr.f32.mxu1 %v5837_v36 }
  0x3f   : > { %4648 = vmatprep.mubr.f32.mxu0 %v5854_v46  ;;  %5199 = vmatprep.subr.bf16.mxu1 %v5198_v16 }
  0x40   : > { %5225 = vmatpush3.bf16.msra.mxu0 %v5792_v12  ;;  %v6044_v12 = vld [vmem:[%s7025_s3 + $0x18] sm:$0xff] }
  0x41   : > { %4550 = vmatmul.mubr.f32.gmra.mrb[2].mxu1 %v5848_v43  ;;  %4649 = vmatmul.mubr.f32.gmra.mrb[4].mxu0 %v5856_v47  ;;  %v1587_v24 = vand.u32 4294901760, %v6044_v12 }
  0x42   : > { %4552 = vmatprep.mubr.f32.mxu1 %v5854_v46  ;;  %4651 = vmatprep.mubr.f32.mxu0 %v5864_v52 }
  0x43   : > { %5201 = vmatpush3.bf16.msra.mxu1 %v5198_v16  ;;  %v6058_v5 = vpack.c.bf16 %v1587_v24, %v1584_v13  ;;  %v6180_v37 = vsub.f32 %v6044_v12, %v1587_v24 }
  0x44   : > { %5227 = vmatprep.subr.bf16.mxu1 %v6011_v8 }
  0x45   : > { %4553 = vmatmul.mubr.f32.gmra.mrb[4].mxu1 %v5856_v47  ;;  %4652 = vmatmul.mubr.f32.gmra.mrb[6].mxu0 %v5883_v0  ;;  %v7039_v50 = vand.u32 4294901760, %v6180_v37 }
  0x46   : > { %4555 = vmatprep.mubr.f32.mxu1 %v5864_v52  ;;  %4654 = vmatprep.mubr.f32.mxu0 %v5904_v28 }
  0x47   : > { %v1835_v16 = vsub.f32 %v6180_v37, %v7039_v50 }
  0x49   : > { %4556 = vmatmul.mubr.f32.gmra.mrb[6].mxu1 %v5883_v0  ;;  %4655 = vmatmul.mubr.f32.gmra.mrb[8].mxu0 %v5906_v33 }
  0x4a   : > { %4558 = vmatprep.mubr.f32.mxu1 %v5904_v28  ;;  %4657 = vmatprep.mubr.f32.mxu0 %v5922_v30 }
  0x4d   : > { %4559 = vmatmul.mubr.f32.gmra.mrb[8].mxu1 %v5906_v33  ;;  %4658 = vmatmul.mubr.f32.gmra.mrb[10].mxu0 %v5924_v48 }
  0x4e   : > { %4561 = vmatprep.mubr.f32.mxu1 %v5922_v30  ;;  %4660 = vmatprep.mubr.f32.mxu0 %v5943_v3 }
  0x51   : > { %4562 = vmatmul.mubr.f32.gmra.mrb[10].mxu1 %v5924_v48  ;;  %4661 = vmatmul.mubr.f32.gmra.mrb[12].mxu0 %v5949_v7 }
  0x52   : > { %4564 = vmatprep.mubr.f32.mxu1 %v5943_v3  ;;  %4663 = vmatprep.mubr.f32.mxu0 %v5955_v18 }
  0x55   : > { %4565 = vmatmul.mubr.f32.gmra.mrb[12].mxu1 %v5949_v7  ;;  %4664 = vmatmul.mubr.f32.gmra.mrb[14].mxu0 %v5966_v27 }
  0x56   : > { %4567 = vmatprep.mubr.f32.mxu1 %v5955_v18  ;;  %4674 = vmatprep.mubr.f32.mxu0 %v5830_v31  ;;  %v291_v31 = vld [vmem:[%s7025_s3 + $0x20] sm:$0xff] }
  0x59   : > { %4568 = vmatmul.mubr.f32.gmra.mrb[14].mxu1 %v5966_v27  ;;  %4675 = vmatmul.mubr.f32.vlgmr.msra.gmra.mrb[0].mxu0 %v5832_v32  ;;  %v292_v32 = vld [vmem:[%s7025_s3 + $0x28] sm:$0xff] }
  0x5a   : > { %4578 = vmatprep.mubr.f32.mxu1 %v5843_v40  ;;  %4677 = vmatprep.mubr.f32.mxu0 %v5837_v36  ;;  %v1590_v36 = vand.u32 4294901760, %v291_v31  ;;  %v1593_v40 = vand.u32 4294901760, %v292_v32 }
  0x5d   : > { %4579 = vmatmul.mubr.f32.vlgmr.msra.gmra.mrb[0].mxu1 %v5846_v41  ;;  %4678 = vmatmul.mubr.f32.gmra.mrb[2].mxu0 %v5848_v43  ;;  %v6097_v41 = vpack.c.bf16 %v1593_v40, %v1590_v36  ;;  %v293_v43 = vld [vmem:[%s7025_s3 + $0x30] sm:$0xff] }
  0x5e   : > { %4581 = vmatprep.mubr.f32.mxu1 %v5852_v45  ;;  %4680 = vmatprep.mubr.f32.mxu0 %v5854_v46  ;;  %v294_v45 = vld [vmem:[%s7025_s3 + $0x38] sm:$0xff]  ;;  %v1596_v46 = vand.u32 4294901760, %v293_v43 }
  0x5f   : > { %5229 = vmatpush3.bf16.msra.mxu1 %v6011_v8 }
  0x60   : > { %5231 = vmatprep.subr.bf16.mxu1 %v6058_v5  ;;  %v6144_v14 = vsub.f32 %v293_v43, %v1596_v46 }
  0x61   : > { %4582 = vmatmul.mubr.f32.gmra.mrb[2].mxu1 %v5862_v51  ;;  %4681 = vmatmul.mubr.f32.gmra.mrb[4].mxu0 %v5856_v47  ;;  %v1599_v47 = vand.u32 4294901760, %v294_v45 }
  0x62   : > { %4584 = vmatprep.mubr.f32.mxu1 %v5868_v54  ;;  %4683 = vmatprep.mubr.f32.mxu0 %v5864_v52  ;;  %v6114_v52 = vsub.f32 %v5986_v1, %v1578_v23  ;;  %v6119_v54 = vsub.f32 %v5991_v2, %v1581_v4  ;;  %v7031_v19 = vand.u32 4294901760, %v6144_v14 }
  0x63   : > { %5233 = vmatpush3.bf16.msra.mxu1 %v6058_v5  ;;  %v6107_v51 = vpack.c.bf16 %v1599_v47, %v1596_v46  ;;  %v1836_v46 = vand.u32 4294901760, %v1835_v16 }
  0x64   : > { %5235 = vmatprep.subr.bf16.mxu1 %v6097_v41  ;;  %v1856_v21 = vsub.f32 %v6144_v14, %v7031_v19  ;;  %v6162_v29 = vpack.c.bf16 %v6119_v54, %v6114_v52 }
  0x65   : > { %4585 = vmatmul.mubr.f32.gmra.mrb[4].mxu1 %v5871_v55  ;;  %4684 = vmatmul.mubr.f32.gmra.mrb[6].mxu0 %v5883_v0  ;;  %v1813_v55 = vand.u32 4294901760, %v6114_v52 }
  0x66   : > { %4587 = vmatprep.mubr.f32.mxu1 %v5878_v60  ;;  %4686 = vmatprep.mubr.f32.mxu0 %v5904_v28  ;;  %v1820_v60 = vand.u32 4294901760, %v6119_v54  ;;  %v1857_v25 = vand.u32 4294901760, %v1856_v21 }
  0x67   : > { %5237 = vmatpush3.bf16.msra.mxu1 %v6097_v41  ;;  %v1814_v0 = vsub.f32 %v6114_v52, %v1813_v55 }
  0x68   : > { %5239 = vmatprep.subr.bf16.mxu1 %v6107_v51 }
  0x69   : > { %4588 = vmatmul.mubr.f32.gmra.mrb[6].mxu1 %v5892_v17  ;;  %4687 = vmatmul.mubr.f32.gmra.mrb[8].mxu0 %v5906_v33  ;;  %v1821_v17 = vsub.f32 %v6119_v54, %v1820_v60  ;;  %v1815_v28 = vand.u32 4294901760, %v1814_v0  ;;  %v7066_v54 = vand.u32 4294901760, %v6180_v37 }
  0x6a   : > { %4590 = vmatprep.mubr.f32.mxu1 %v5914_v35  ;;  %4689 = vmatprep.mubr.f32.mxu0 %v5922_v30  ;;  %v6134_v30 = vsub.f32 %v292_v32, %v1593_v40 }
  0x6b   : > { %5241 = vmatpush3.bf16.msra.mxu1 %v6107_v51  ;;  %v1822_v33 = vand.u32 4294901760, %v1821_v17 }
  0x6d   : > { %4591 = vmatmul.mubr.f32.gmra.mrb[8].mxu1 %v5920_v42  ;;  %4690 = vmatmul.mubr.f32.gmra.mrb[10].mxu0 %v5924_v48  ;;  %v6129_v35 = vpack.c.bf16 %v1822_v33, %v1815_v28  ;;  %v6132_v42 = vsub.f32 %v291_v31, %v1590_v36 }
  0x6e   : > { %4593 = vmatprep.mubr.f32.mxu1 %v5936_v62  ;;  %4692 = vmatprep.mubr.f32.mxu0 %v5943_v3  ;;  %v7033_v62 = vand.u32 4294901760, %v6134_v30 }
  0x6f   : > { %5243 = vmatprep.subr.bf16.mxu1 %v6129_v35  ;;  %v7034_v48 = vand.u32 4294901760, %v6132_v42  ;;  %v6166_v34 = vpack.c.bf16 %v6134_v30, %v6132_v42 }
  0x70   : > { %v1849_v3 = vsub.f32 %v6134_v30, %v7033_v62 }
  0x71   : > { %4594 = vmatmul.mubr.f32.gmra.mrb[10].mxu1 %v5939_v63  ;;  %4693 = vmatmul.mubr.f32.gmra.mrb[12].mxu0 %v5949_v7  ;;  %v1842_v63 = vsub.f32 %v6132_v42, %v7034_v48 }
  0x72   : > { %4596 = vmatprep.mubr.f32.mxu1 %v5953_v15  ;;  %4695 = vmatprep.mubr.f32.mxu0 %v5955_v18  ;;  %v1850_v7 = vand.u32 4294901760, %v1849_v3  ;;  %v6146_v15 = vsub.f32 %v294_v45, %v1599_v47 }
  0x73   : > { %v1843_v6 = vand.u32 4294901760, %v1842_v63 }
  0x74   : > { %v7030_v20 = vand.u32 4294901760, %v6146_v15  ;;  %v6170_v9 = vpack.c.bf16 %v6146_v15, %v6144_v14 }
  0x75   : > { %4597 = vmatmul.mubr.f32.gmra.mrb[12].mxu1 %v5960_v22  ;;  %4696 = vmatmul.mubr.f32.gmra.mrb[14].mxu0 %v5966_v27  ;;  %v6148_v18 = vpack.c.bf16 %v1850_v7, %v1843_v6 }
  0x76   : > { %4599 = vmatprep.mubr.f32.mxu1 %v5964_v26  ;;  %v1863_v22 = vsub.f32 %v6146_v15, %v7030_v20 }
  0x78   : > { %v1864_v26 = vand.u32 4294901760, %v1863_v22 }
  0x79   : > { %4600 = vmatmul.mubr.f32.gmra.mrb[14].mxu1 %v5973_v10  ;;  %v6175_v10 = vsub.f32 %v6039_v11, %v1584_v13 }
  0x7a   : > { %v6158_v27 = vpack.c.bf16 %v1864_v26, %v1857_v25 }
  0x7b   : > { %v7040_v49 = vand.u32 4294901760, %v6175_v10  ;;  %v7065_v52 = vand.u32 4294901760, %v6175_v10 }
  0x7d   : > { %v1828_v2 = vsub.f32 %v6175_v10, %v7040_v49 }
  0x7f   : > { %v1829_v45 = vand.u32 4294901760, %v1828_v2 }
 0x12c   : > { %v4676_v38 = vpop.f32.mrb[0].mxu0 }
 0x12d   : > { %v1412_v39 = vpop.f32.mrb[1].mxu0 }
 0x130   : > { %v4580_v53 = vpop.f32.mrb[0].mxu1  ;;  %v4679_v56 = vpop.f32.mrb[2].mxu0 }
 0x131   : > { %v5418_v57 = vadd.f32 %v4580_v53, %v6185_v44  ;;  %v862_v58 = vpop.f32.mrb[1].mxu1  ;;  %v1424_v59 = vpop.f32.mrb[3].mxu0 }
 0x132   : > { %v5420_v61 = vadd.f32 %v6185_v44, %v862_v58 }
 0x133   : > { %v5419_v1 = vadd.f32 %v5418_v57, %v4676_v38 }
 0x134   : > { %v5421_v23 = vadd.f32 %v5420_v61, %v1412_v39  ;;  %v4583_v4 = vpop.f32.mrb[2].mxu1  ;;  %v4682_v11 = vpop.f32.mrb[4].mxu0 }
 0x135   : > { %v1507_v12 = vmax.f32 %v5419_v1, 0.0  ;;  %v5422_v13 = vadd.f32 %v4583_v4, %v6185_v44  ;;  %v876_v24 = vpop.f32.mrb[3].mxu1  ;;  %v1436_v31 = vpop.f32.mrb[5].mxu0 }
 0x136   : > { %v1506_v32 = vmax.f32 %v5421_v23, 0.0  ;;  %v5424_v36 = vadd.f32 %v6185_v44, %v876_v24 }
 0x137   : > { %v1533_v40 = vsel %vm1528_vm1, %v1507_v12, 0  ;;  %v5423_v43 = vadd.f32 %v5422_v13, %v4679_v56  ;;  %v6214_v56 = vpack.c.bf16 %v1836_v46, %v1829_v45 }
 0x138   : > { %v6200_v47 = vand.u32 4294901760, %v1533_v40  ;;  %v1530_v0 = vsel %vm1528_vm1, %v1506_v32, 0  ;;  %v5425_v17 = vadd.f32 %v5424_v36, %v1424_v59  ;;  %v4586_v28 = vpop.f32.mrb[4].mxu1  ;;  %v4685_v33 = vpop.f32.mrb[6].mxu0 }
 0x139   : > { %v6203_v63 = vand.u32 4294901760, %v1530_v0  ;;  %v1509_v3 = vmax.f32 %v5423_v43, 0.0  ;;  %v5426_v6 = vadd.f32 %v4586_v28, %v6185_v44  ;;  %v890_v7 = vpop.f32.mrb[5].mxu1  ;;  %v1448_v21 = vpop.f32.mrb[7].mxu0 }
 0x13a   : > { %v6207_v22 = vsub.f32 %v1533_v40, %v6200_v47  ;;  %v1508_v25 = vmax.f32 %v5425_v17, 0.0  ;;  %v5428_v26 = vadd.f32 %v6185_v44, %v890_v7 }
 0x13b   : > { %v6211_v38 = vsub.f32 %v1530_v0, %v6203_v63  ;;  %v1539_v39 = vsel %vm1528_vm1, %v1509_v3, 0  ;;  %v5427_v53 = vadd.f32 %v5426_v6, %v4682_v11 }
 0x13c   : > { %v7037_v57 = vand.u32 4294901760, %v6207_v22  ;;  %v6217_v58 = vand.u32 4294901760, %v1539_v39  ;;  %v1536_v59 = vsel %vm1528_vm1, %v1508_v25, 0  ;;  %v5429_v61 = vadd.f32 %v5428_v26, %v1436_v31  ;;  %v4589_v1 = vpop.f32.mrb[6].mxu1  ;;  %v4688_v2 = vpop.f32.mrb[8].mxu0 }
 0x13d   : > { %v6220_v16 = vand.u32 4294901760, %v1536_v59  ;;  %v1511_v23 = vmax.f32 %v5427_v53, 0.0  ;;  %v5430_v4 = vadd.f32 %v4589_v1, %v6185_v44  ;;  %v904_v12 = vpop.f32.mrb[7].mxu1  ;;  %v1460_v13 = vpop.f32.mrb[9].mxu0  ;;  %v1652_v11 = vand.u32 4294901760, %v6211_v38 }
 0x13e   : > { %v1663_v24 = vsub.f32 %v6207_v22, %v7037_v57  ;;  %v6228_v32 = vsub.f32 %v1539_v39, %v6217_v58  ;;  %v1510_v36 = vmax.f32 %v5429_v61, 0.0  ;;  %v5432_v31 = vadd.f32 %v6185_v44, %v904_v12 }
 0x13f   : > { %v6232_v40 = vsub.f32 %v1536_v59, %v6220_v16  ;;  %v1545_v43 = vsel %vm1528_vm1, %v1511_v23, 0  ;;  %v5431_v45 = vadd.f32 %v5430_v4, %v4685_v33  ;;  %v1653_v46 = vsub.f32 %v6211_v38, %v1652_v11 }
 0x140   : > { %v1664_v0 = vand.u32 4294901760, %v1663_v24  ;;  %v6238_v17 = vand.u32 4294901760, %v1545_v43  ;;  %v1542_v28 = vsel %vm1528_vm1, %v1510_v36, 0  ;;  %v5433_v3 = vadd.f32 %v5432_v31, %v1448_v21  ;;  %v4592_v6 = vpop.f32.mrb[8].mxu1  ;;  %v4691_v7 = vpop.f32.mrb[10].mxu0 }
 0x141   : > { %v6241_v25 = vand.u32 4294901760, %v1542_v28  ;;  %v1513_v26 = vmax.f32 %v5431_v45, 0.0  ;;  %v5434_v39 = vadd.f32 %v4592_v6, %v6185_v44  ;;  %v918_v53 = vpop.f32.mrb[9].mxu1  ;;  %v1472_v59 = vpop.f32.mrb[11].mxu0  ;;  %v1654_v33 = vand.u32 4294901760, %v1653_v46 }
 0x142   : > { %v6245_v61 = vsub.f32 %v1545_v43, %v6238_v17  ;;  %v1512_v1 = vmax.f32 %v5433_v3, 0.0  ;;  %v5436_v23 = vadd.f32 %v6185_v44, %v918_v53  ;;  %v7035_v4 = vand.u32 4294901760, %v6232_v40 }
 0x143   : > { %v6250_v21 = vsub.f32 %v1542_v28, %v6241_v25  ;;  %v1551_v12 = vsel %vm1528_vm1, %v1513_v26, 0  ;;  %v5435_v24 = vadd.f32 %v5434_v39, %v4688_v2  ;;  %4714 = vmatprep.mubr.f32.mxu1 %v1654_v33  ;;  %v7032_v36 = vand.u32 4294901760, %v6228_v32 }
 0x144   : > { %v6254_v31 = vand.u32 4294901760, %v1551_v12  ;;  %v1548_v45 = vsel %vm1528_vm1, %v1512_v1, 0  ;;  %v5437_v43 = vadd.f32 %v5436_v23, %v1460_v13  ;;  %v4595_v46 = vpop.f32.mrb[10].mxu1  ;;  %v4694_v3 = vpop.f32.mrb[12].mxu0  ;;  %4715 = vmatmul.mubr.f32.vlgmr.msra.gmra.mrb[16].mxu1 %v1664_v0  ;;  %v1673_v6 = vsub.f32 %v6232_v40, %v7035_v4 }
 0x145   : > { %v6260_v28 = vand.u32 4294901760, %v1548_v45  ;;  %v1515_v53 = vmax.f32 %v5435_v24, 0.0  ;;  %v5438_v2 = vadd.f32 %v4595_v46, %v6185_v44  ;;  %5245 = vmatpush3.bf16.msra.mxu1 %v6129_v35  ;;  %v932_v26 = vpop.f32.mrb[11].mxu1  ;;  %v1484_v39 = vpop.f32.mrb[13].mxu0  ;;  %v1683_v13 = vsub.f32 %v6228_v32, %v7032_v36 }
 0x146   : > { %v6268_v33 = vsub.f32 %v1551_v12, %v6254_v31  ;;  %v1514_v0 = vmax.f32 %v5437_v43, 0.0  ;;  %v5440_v1 = vadd.f32 %v6185_v44, %v932_v26  ;;  %v1674_v23 = vand.u32 4294901760, %v1673_v6  ;;  %5247 = vmatprep.subr.bf16.mxu1 %v6214_v56 }
 0x147   : > { %v6273_v24 = vsub.f32 %v1548_v45, %v6260_v28  ;;  %v1557_v35 = vsel %vm1528_vm1, %v1515_v53, 0  ;;  %v5439_v46 = vadd.f32 %v5438_v2, %v4691_v7  ;;  %v1684_v20 = vand.u32 4294901760, %v1683_v13 }
 0x148   : > { %v6276_v19 = vand.u32 4294901760, %v1557_v35  ;;  %v1554_v36 = vsel %vm1528_vm1, %v1514_v0, 0  ;;  %v5441_v62 = vadd.f32 %v5440_v1, %v1472_v59  ;;  %4717 = vmatprep.mubr.f32.mxu1 %v1674_v23  ;;  %v4598_v12 = vpop.f32.mrb[12].mxu1  ;;  %v4697_v43 = vpop.f32.mrb[14].mxu0  ;;  %v7036_v26 = vand.u32 4294901760, %v6250_v21 }
 0x149   : > { %v6280_v6 = vand.u32 4294901760, %v1554_v36  ;;  %v1517_v48 = vmax.f32 %v5439_v46, 0.0  ;;  %v5442_v45 = vadd.f32 %v4598_v12, %v6185_v44  ;;  %4718 = vmatmul.mubr.f32.gmra.mrb[18].mxu1 %v1684_v20  ;;  %v946_v4 = vpop.f32.mrb[13].mxu1  ;;  %v1496_v53 = vpop.f32.mrb[15].mxu0  ;;  %v7038_v7 = vand.u32 4294901760, %v6245_v61 }
 0x14a   : > { %v6285_v2 = vsub.f32 %v1557_v35, %v6276_v19  ;;  %v1516_v13 = vmax.f32 %v5441_v62, 0.0  ;;  %v5444_v59 = vadd.f32 %v6185_v44, %v946_v4  ;;  %v1693_v0 = vsub.f32 %v6250_v21, %v7036_v26  ;;  %5249 = vmatpush3.bf16.msra.mxu1 %v6214_v56 }
 0x14b   : > { %v6293_v1 = vsub.f32 %v1554_v36, %v6280_v6  ;;  %v1563_v20 = vsel %vm1528_vm1, %v1517_v48, 0  ;;  %v5443_v23 = vadd.f32 %v5442_v45, %v4694_v3  ;;  %v1703_v35 = vsub.f32 %v6245_v61, %v7038_v7  ;;  %5251 = vmatprep.subr.bf16.mxu1 %v6148_v18 }
 0x14c   : > { %v6300_v62 = vand.u32 4294901760, %v1563_v20  ;;  %v1560_v4 = vsel %vm1528_vm1, %v1516_v13, 0  ;;  %v5445_v46 = vadd.f32 %v5444_v59, %v1484_v39  ;;  %v1694_v12 = vand.u32 4294901760, %v1693_v0  ;;  %v4601_v26 = vpop.f32.mrb[14].mxu1 }
 0x14d   : > { %v6303_v56 = vand.u32 4294901760, %v1560_v4  ;;  %v1519_v36 = vmax.f32 %v5443_v23, 0.0  ;;  %v5446_v57 = vadd.f32 %v4601_v26, %v6185_v44  ;;  %v1704_v48 = vand.u32 4294901760, %v1703_v35  ;;  %v960_v3 = vpop.f32.mrb[15].mxu1 }
 0x14e   : > { %v6307_v45 = vsub.f32 %v1563_v20, %v6300_v62  ;;  %v1518_v7 = vmax.f32 %v5445_v46, 0.0  ;;  %4720 = vmatprep.mubr.f32.mxu1 %v1694_v12  ;;  %v5448_v50 = vadd.f32 %v6185_v44, %v960_v3  ;;  %v1712_v49 = vand.u32 4294901760, %v6273_v24  ;;  %5253 = vmatpush3.bf16.msra.mxu1 %v6148_v18 }
 0x14f   : > { %v6313_v39 = vsub.f32 %v1560_v4, %v6303_v56  ;;  %v1569_v13 = vsel %vm1528_vm1, %v1519_v36, 0  ;;  %v5447_v59 = vadd.f32 %v5446_v57, %v4697_v43  ;;  %4721 = vmatmul.mubr.f32.gmra.mrb[20].mxu1 %v1704_v48  ;;  %v7044_v26 = vand.u32 4294901760, %v6268_v33  ;;  %5255 = vmatprep.subr.bf16.mxu1 %v6158_v27 }
 0x150   : > { %v6318_v0 = vand.u32 4294901760, %v1569_v13  ;;  %v1566_v20 = vsel %vm1528_vm1, %v1518_v7, 0  ;;  %v5449_v44 = vadd.f32 %v5448_v50, %v1496_v53  ;;  %v1713_v18 = vsub.f32 %v6273_v24, %v1712_v49 }
 0x151   : > { %v6324_v23 = vand.u32 4294901760, %v1566_v20  ;;  %v1521_v35 = vmax.f32 %v5447_v59, 0.0  ;;  %v1723_v57 = vsub.f32 %v6268_v33, %v7044_v26  ;;  %v7041_v43 = vand.u32 4294901760, %v6293_v1 }
 0x152   : > { %v6331_v4 = vsub.f32 %v1569_v13, %v6318_v0  ;;  %v1520_v46 = vmax.f32 %v5449_v44, 0.0  ;;  %v1714_v12 = vand.u32 4294901760, %v1713_v18  ;;  %v7042_v50 = vand.u32 4294901760, %v6285_v2  ;;  %5257 = vmatpush3.bf16.msra.mxu1 %v6158_v27 }
 0x153   : > { %v6336_v53 = vsub.f32 %v1566_v20, %v6324_v23  ;;  %v1575_v7 = vsel %vm1528_vm1, %v1521_v35, 0  ;;  %v1724_v36 = vand.u32 4294901760, %v1723_v57  ;;  %v1733_v48 = vsub.f32 %v6293_v1, %v7041_v43  ;;  %5259 = vmatprep.subr.bf16.mxu1 %v6162_v29 }
 0x154   : > { %v6343_v3 = vand.u32 4294901760, %v1575_v7  ;;  %v1572_v13 = vsel %vm1528_vm1, %v1520_v46, 0  ;;  %4723 = vmatprep.mubr.f32.mxu1 %v1714_v12  ;;  %v1743_v27 = vsub.f32 %v6285_v2, %v7042_v50  ;;  %v7043_v59 = vand.u32 4294901760, %v6313_v39 }
 0x155   : > { %v6350_v20 = vand.u32 4294901760, %v1572_v13  ;;  %4724 = vmatmul.mubr.f32.gmra.mrb[22].mxu1 %v1724_v36  ;;  %v1734_v44 = vand.u32 4294901760, %v1733_v48  ;;  %v7045_v18 = vand.u32 4294901760, %v6307_v45  ;;  %v7046_v35 = vand.u32 4294901760, %v6336_v53 }
 0x156   : > { %v6355_v57 = vsub.f32 %v1575_v7, %v6343_v3  ;;  %v1744_v43 = vand.u32 4294901760, %v1743_v27  ;;  %v1753_v46 = vsub.f32 %v6313_v39, %v7043_v59  ;;  %v1782_v7 = vand.u32 4294901760, %v6331_v4 }
 0x157   : > { %v6361_v12 = vsub.f32 %v1572_v13, %v6350_v20  ;;  %4726 = vmatprep.mubr.f32.mxu1 %v1734_v44  ;;  %v1763_v36 = vsub.f32 %v6307_v45, %v7045_v18  ;;  %v1773_v48 = vsub.f32 %v6336_v53, %v7046_v35 }
 0x158   : > { %v1754_v50 = vand.u32 4294901760, %v1753_v46  ;;  %v1783_v13 = vsub.f32 %v6331_v4, %v1782_v7  ;;  %v1802_v18 = vand.u32 4294901760, %v6355_v57 }
 0x159   : > { %4727 = vmatmul.mubr.f32.gmra.mrb[24].mxu1 %v1744_v43  ;;  %v1792_v27 = vand.u32 4294901760, %v6361_v12  ;;  %v1774_v59 = vand.u32 4294901760, %v1773_v48  ;;  %v1764_v26 = vand.u32 4294901760, %v1763_v36  ;;  %v5262_v36 = vpack.c.bf16 %v6180_v37, %v6175_v10 }
 0x15a   : > { %4729 = vmatprep.mubr.f32.mxu1 %v1754_v50  ;;  %v1784_v46 = vand.u32 4294901760, %v1783_v13  ;;  %v1803_v43 = vsub.f32 %v6355_v57, %v1802_v18  ;;  %v7072_v10 = vand.u32 4294901760, %v6250_v21  ;;  %v7073_v37 = vand.u32 4294901760, %v6144_v14 }
 0x15b   : > { %v1793_v44 = vsub.f32 %v6361_v12, %v1792_v27  ;;  %v7078_v14 = vand.u32 4294901760, %v6285_v2 }
 0x15c   : > { %v1804_v50 = vand.u32 4294901760, %v1803_v43  ;;  %v5290_v43 = vpack.c.bf16 %v1820_v60, %v1813_v55  ;;  %v5294_v55 = vpack.c.bf16 %v7066_v54, %v7065_v52  ;;  %v7067_v60 = vand.u32 4294901760, %v6207_v22 }
 0x15d   : > { %4730 = vmatmul.mubr.f32.gmra.mrb[26].mxu1 %v1764_v26  ;;  %v1794_v35 = vand.u32 4294901760, %v1793_v44 }
 0x15e   : > { %4732 = vmatprep.mubr.f32.mxu1 %v1774_v59 }
 0x161   : > { %4733 = vmatmul.mubr.f32.gmra.mrb[28].mxu1 %v1784_v46 }
 0x162   : > { %4735 = vmatprep.mubr.f32.mxu1 %v1794_v35  ;;  %v6426_v35 = vld [vmem:[%s7027_s5 + $0x18] sm:$0xff] }
 0x163   : > { %v7047_v13 = vand.u32 4294901760, %v6426_v35  ;;  %v7083_v52 = vand.u32 4294901760, %v6426_v35 }
 0x165   : > { %4736 = vmatmul.mubr.f32.gmra.mrb[30].mxu1 %v1804_v50  ;;  %v7068_v50 = vand.u32 4294901760, %v6232_v40  ;;  %v6645_v54 = vsub.f32 %v6426_v35, %v7083_v52 }
 0x166   : > { %4754 = vmatprep.mubr.f32.mxu1 %v6203_v63 }
 0x169   : > { %4755 = vmatmul.mubr.f32.vlgmr.msra.gmra.mrb[16].mxu1 %v6200_v47 }
 0x16a   : > { %5261 = vmatpush3.bf16.msra.mxu1 %v6162_v29  ;;  %4757 = vmatprep.mubr.f32.mxu1 %v6220_v16  ;;  %v6408_v29 = vld [vmem:[%s7027_s5] sm:$0xff] }
 0x16b   : > { %5263 = vmatprep.subr.bf16.mxu1 %v5262_v36  ;;  %v2830_v26 = vand.u32 4294901760, %v6408_v29 }
 0x16d   : > { %4758 = vmatmul.mubr.f32.gmra.mrb[18].mxu1 %v6217_v58 }
 0x16e   : > { %4760 = vmatprep.mubr.f32.mxu1 %v6241_v25  ;;  %5265 = vmatpush3.bf16.msra.mxu1 %v5262_v36  ;;  %v7069_v36 = vand.u32 4294901760, %v6132_v42  ;;  %v7076_v42 = vand.u32 4294901760, %v6268_v33 }
 0x16f   : > { %5267 = vmatprep.subr.bf16.mxu1 %v6166_v34 }
 0x171   : > { %4761 = vmatmul.mubr.f32.gmra.mrb[20].mxu1 %v6238_v17 }
 0x172   : > { %4763 = vmatprep.mubr.f32.mxu1 %v6260_v28  ;;  %5269 = vmatpush3.bf16.msra.mxu1 %v6166_v34  ;;  %v6413_v34 = vld [vmem:[%s7027_s5 + $0x8] sm:$0xff] }
 0x173   : > { %5271 = vmatprep.subr.bf16.mxu1 %v6170_v9  ;;  %v2833_v59 = vand.u32 4294901760, %v6413_v34 }
 0x175   : > { %4764 = vmatmul.mubr.f32.gmra.mrb[22].mxu1 %v6254_v31  ;;  %v6434_v44 = vpack.c.bf16 %v2833_v59, %v2830_v26 }
 0x176   : > { %4766 = vmatprep.mubr.f32.mxu1 %v6280_v6  ;;  %5273 = vmatpush3.bf16.msra.mxu1 %v6170_v9  ;;  %v6418_v9 = vld [vmem:[%s7027_s5 + $0x10] sm:$0xff] }
 0x177   : > { %5275 = vmatprep.subr.bf16.mxu1 %v6011_v8  ;;  %v7048_v48 = vand.u32 4294901760, %v6418_v9  ;;  %5323 = vmatprep.subr.bf16.mxu0 %v6434_v44 }
 0x178   : > { %5325 = vmatpush3.bf16.msra.mxu0 %v6434_v44 }
 0x179   : > { %4767 = vmatmul.mubr.f32.gmra.mrb[24].mxu1 %v6276_v19  ;;  %v6441_v46 = vpack.c.bf16 %v7047_v13, %v7048_v48  ;;  %v7070_v13 = vand.u32 4294901760, %v6134_v30  ;;  %v7077_v30 = vand.u32 4294901760, %v6293_v1 }
 0x17a   : > { %4769 = vmatprep.mubr.f32.mxu1 %v6303_v56 }
 0x17b   : > { %5327 = vmatprep.subr.bf16.mxu0 %v6441_v46  ;;  %v5298_v48 = vpack.c.bf16 %v7070_v13, %v7069_v36  ;;  %v7082_v13 = vand.u32 4294901760, %v6418_v9 }
 0x17c   : > { %5329 = vmatpush3.bf16.msra.mxu0 %v6441_v46 }
 0x17d   : > { %4770 = vmatmul.mubr.f32.gmra.mrb[26].mxu1 %v6300_v62 }
 0x17e   : > { %4772 = vmatprep.mubr.f32.mxu1 %v6324_v23 }
 0x181   : > { %4773 = vmatmul.mubr.f32.gmra.mrb[28].mxu1 %v6318_v0 }
 0x182   : > { %4775 = vmatprep.mubr.f32.mxu1 %v6350_v20 }
 0x185   : > { %4776 = vmatmul.mubr.f32.gmra.mrb[30].mxu1 %v6343_v3 }
 0x186   : > { %4794 = vmatprep.mubr.f32.mxu1 %v6211_v38  ;;  %v7071_v38 = vand.u32 4294901760, %v6228_v32 }
 0x189   : > { %4795 = vmatmul.mubr.f32.vlgmr.msra.gmra.mrb[16].mxu1 %v6207_v22  ;;  %v7074_v22 = vand.u32 4294901760, %v6146_v15  ;;  %v7079_v15 = vand.u32 4294901760, %v6313_v39 }
 0x18a   : > { %5277 = vmatpush3.bf16.msra.mxu1 %v6011_v8  ;;  %4797 = vmatprep.mubr.f32.mxu1 %v6232_v40  ;;  %v7075_v40 = vand.u32 4294901760, %v6245_v61 }
 0x18b   : > { %5279 = vmatprep.subr.bf16.mxu1 %v6058_v5 }
 0x18d   : > { %4798 = vmatmul.mubr.f32.gmra.mrb[18].mxu1 %v6228_v32  ;;  %v7080_v32 = vand.u32 4294901760, %v6307_v45 }
 0x18e   : > { %4800 = vmatprep.mubr.f32.mxu1 %v6250_v21  ;;  %5281 = vmatpush3.bf16.msra.mxu1 %v6058_v5 }
 0x18f   : > { %5283 = vmatprep.subr.bf16.mxu1 %v6097_v41 }
 0x191   : > { %4801 = vmatmul.mubr.f32.gmra.mrb[20].mxu1 %v6245_v61  ;;  %v6584_v61 = vsub.f32 %v6413_v34, %v2833_v59 }
 0x192   : > { %4803 = vmatprep.mubr.f32.mxu1 %v6273_v24  ;;  %5285 = vmatpush3.bf16.msra.mxu1 %v6097_v41 }
 0x193   : > { %5287 = vmatprep.subr.bf16.mxu1 %v6107_v51 }
 0x195   : > { %4804 = vmatmul.mubr.f32.gmra.mrb[22].mxu1 %v6268_v33 }
 0x196   : > { %4806 = vmatprep.mubr.f32.mxu1 %v6293_v1  ;;  %5289 = vmatpush3.bf16.msra.mxu1 %v6107_v51 }
 0x197   : > { %5291 = vmatprep.subr.bf16.mxu1 %v5290_v43 }
 0x199   : > { %4807 = vmatmul.mubr.f32.gmra.mrb[24].mxu1 %v6285_v2 }
 0x19a   : > { %4809 = vmatprep.mubr.f32.mxu1 %v6313_v39 }
 0x19d   : > { %4810 = vmatmul.mubr.f32.gmra.mrb[26].mxu1 %v6307_v45 }
 0x19e   : > { %4812 = vmatprep.mubr.f32.mxu1 %v6336_v53 }
 0x1a1   : > { %4813 = vmatmul.mubr.f32.gmra.mrb[28].mxu1 %v6331_v4 }
 0x1a2   : > { %4815 = vmatprep.mubr.f32.mxu1 %v6361_v12 }
 0x1a5   : > { %4816 = vmatmul.mubr.f32.gmra.mrb[30].mxu1 %v6355_v57 }
 0x1a6   : > { %4834 = vmatprep.mubr.f32.mxu1 %v1652_v11  ;;  %v5302_v11 = vpack.c.bf16 %v7074_v22, %v7073_v37 }
 0x1a9   : > { %4835 = vmatmul.mubr.f32.vlgmr.msra.gmra.mrb[16].mxu1 %v7067_v60 }
 0x1aa   : > { %5293 = vmatpush3.bf16.msra.mxu1 %v5290_v43  ;;  %4837 = vmatprep.mubr.f32.mxu1 %v7068_v50  ;;  %v6640_v43 = vsub.f32 %v6418_v9, %v7082_v13 }
 0x1ab   : > { %5295 = vmatprep.subr.bf16.mxu1 %v5294_v55 }
 0x1ac   : > { %v3079_v50 = vand.u32 4294901760, %v6640_v43 }
 0x1ad   : > { %4838 = vmatmul.mubr.f32.gmra.mrb[18].mxu1 %v7071_v38 }
 0x1ae   : > { %4840 = vmatprep.mubr.f32.mxu1 %v7072_v10  ;;  %5297 = vmatpush3.bf16.msra.mxu1 %v5294_v55  ;;  %v6650_v55 = vld [vmem:[%s7026_s4] ss:$0 sm:$0xff]  ;;  %v3086_v10 = vand.u32 4294901760, %v6645_v54  ;;  %v3080_v35 = vsub.f32 %v6640_v43, %v3079_v50 }
 0x1af   : > { %5299 = vmatprep.subr.bf16.mxu1 %v5298_v48 }
 0x1b1   : > { %4841 = vmatmul.mubr.f32.gmra.mrb[20].mxu1 %v7075_v40 }
 0x1b2   : > { %4843 = vmatprep.mubr.f32.mxu1 %v1712_v49  ;;  %5301 = vmatpush3.bf16.msra.mxu1 %v5298_v48  ;;  %v7081_v49 = vand.u32 4294901760, %v6336_v53 }
 0x1b3   : > { %5303 = vmatprep.subr.bf16.mxu1 %v5302_v11 }
 0x1b5   : > { %4844 = vmatmul.mubr.f32.gmra.mrb[22].mxu1 %v7076_v42 }
 0x1b6   : > { %4846 = vmatprep.mubr.f32.mxu1 %v7077_v30  ;;  %5305 = vmatpush3.bf16.msra.mxu1 %v5302_v11 }
 0x1b7   : > { %5307 = vmatprep.subr.bf16.mxu1 %v6011_v8 }
 0x1b9   : > { %4847 = vmatmul.mubr.f32.gmra.mrb[24].mxu1 %v7078_v14  ;;  %v3087_v14 = vsub.f32 %v6645_v54, %v3086_v10 }
 0x1ba   : > { %4849 = vmatprep.mubr.f32.mxu1 %v7079_v15 }
 0x1bd   : > { %4850 = vmatmul.mubr.f32.gmra.mrb[26].mxu1 %v7080_v32 }
 0x1be   : > { %4852 = vmatprep.mubr.f32.mxu1 %v7081_v49 }
 0x1c1   : > { %4853 = vmatmul.mubr.f32.gmra.mrb[28].mxu1 %v1782_v7 }
 0x1c2   : > { %4855 = vmatprep.mubr.f32.mxu1 %v1792_v27 }
 0x1c5   : > { %4856 = vmatmul.mubr.f32.gmra.mrb[30].mxu1 %v1802_v18 }
 0x1c6   : > { %4874 = vmatprep.mubr.f32.mxu1 %v6203_v63 }
 0x1c9   : > { %4875 = vmatmul.mubr.f32.vlgmr.msra.gmra.mrb[16].mxu1 %v6200_v47 }
 0x1ca   : > { %5309 = vmatpush3.bf16.msra.mxu1 %v6011_v8  ;;  %4877 = vmatprep.mubr.f32.mxu1 %v6220_v16  ;;  %v300_v8 = vld [vmem:[%s7027_s5 + $0x20] sm:$0xff] }
 0x1cb   : > { %5311 = vmatprep.subr.bf16.mxu1 %v6058_v5 }
 0x1cd   : > { %4878 = vmatmul.mubr.f32.gmra.mrb[18].mxu1 %v6217_v58 }
 0x1ce   : > { %4880 = vmatprep.mubr.f32.mxu1 %v6241_v25  ;;  %5313 = vmatpush3.bf16.msra.mxu1 %v6058_v5  ;;  %v301_v5 = vld [vmem:[%s7027_s5 + $0x28] sm:$0xff] }
 0x1cf   : > { %5315 = vmatprep.subr.bf16.mxu1 %v6097_v41 }
 0x1d1   : > { %4881 = vmatmul.mubr.f32.gmra.mrb[20].mxu1 %v6238_v17 }
 0x1d2   : > { %4883 = vmatprep.mubr.f32.mxu1 %v6260_v28  ;;  %5317 = vmatpush3.bf16.msra.mxu1 %v6097_v41  ;;  %v2842_v41 = vand.u32 4294901760, %v300_v8 }
 0x1d3   : > { %5319 = vmatprep.subr.bf16.mxu1 %v6107_v51 }
 0x1d4   : > { %v6596_v1 = vsub.f32 %v300_v8, %v2842_v41 }
 0x1d5   : > { %4884 = vmatmul.mubr.f32.gmra.mrb[22].mxu1 %v6254_v31 }
 0x1d6   : > { %4886 = vmatprep.mubr.f32.mxu1 %v6280_v6  ;;  %5321 = vmatpush3.bf16.msra.mxu1 %v6107_v51  ;;  %v2845_v51 = vand.u32 4294901760, %v301_v5 }
 0x1d9   : > { %4887 = vmatmul.mubr.f32.gmra.mrb[24].mxu1 %v6276_v19 }
 0x1da   : > { %4889 = vmatprep.mubr.f32.mxu1 %v6303_v56 }
 0x1dd   : > { %4890 = vmatmul.mubr.f32.gmra.mrb[26].mxu1 %v6300_v62 }
 0x1de   : > { %4892 = vmatprep.mubr.f32.mxu1 %v6324_v23 }
 0x1e1   : > { %4893 = vmatmul.mubr.f32.gmra.mrb[28].mxu1 %v6318_v0 }
 0x1e2   : > { %4895 = vmatprep.mubr.f32.mxu1 %v6350_v20 }
 0x1e5   : > { %4896 = vmatmul.mubr.f32.gmra.mrb[30].mxu1 %v6343_v3 }
 0x1e6   : > { %4914 = vmatprep.mubr.f32.mxu1 %v6203_v63  ;;  %v303_v63 = vld [vmem:[%s7027_s5 + $0x38] sm:$0xff] }
 0x1e9   : > { %4915 = vmatmul.mubr.f32.vlgmr.msra.gmra.mrb[16].mxu1 %v6200_v47  ;;  %v302_v47 = vld [vmem:[%s7027_s5 + $0x30] sm:$0xff] }
 0x1ea   : > { %4917 = vmatprep.mubr.f32.mxu1 %v6220_v16  ;;  %v2851_v16 = vand.u32 4294901760, %v303_v63 }
 0x1ec   : > { %v6611_v4 = vsub.f32 %v303_v63, %v2851_v16  ;;  %v3081_v63 = vand.u32 4294901760, %v3080_v35 }
 0x1ed   : > { %4918 = vmatmul.mubr.f32.gmra.mrb[18].mxu1 %v6217_v58  ;;  %v2848_v58 = vand.u32 4294901760, %v302_v47 }
 0x1ee   : > { %4920 = vmatprep.mubr.f32.mxu1 %v6241_v25  ;;  %v6579_v25 = vsub.f32 %v6408_v29, %v2830_v26  ;;  %v7049_v18 = vand.u32 4294901760, %v6611_v4 }
 0x1f0   : > { %v3065_v21 = vand.u32 4294901760, %v6579_v25  ;;  %v3115_v7 = vsub.f32 %v6611_v4, %v7049_v18  ;;  %v6627_v26 = vpack.c.bf16 %v6584_v61, %v6579_v25 }
 0x1f1   : > { %4921 = vmatmul.mubr.f32.gmra.mrb[20].mxu1 %v6238_v17  ;;  %v6572_v17 = vpack.c.bf16 %v2851_v16, %v2848_v58 }
 0x1f2   : > { %4923 = vmatprep.mubr.f32.mxu1 %v6260_v28  ;;  %v3066_v28 = vsub.f32 %v6579_v25, %v3065_v21  ;;  %v3116_v29 = vand.u32 4294901760, %v3115_v7  ;;  %v5390_v25 = vpack.c.bf16 %v3086_v10, %v3079_v50  ;;  %v7091_v50 = vand.u32 4294901760, %v6611_v4 }
 0x1f4   : > { %v3067_v24 = vand.u32 4294901760, %v3066_v28 }
 0x1f5   : > { %4924 = vmatmul.mubr.f32.gmra.mrb[22].mxu1 %v6254_v31  ;;  %v3072_v31 = vand.u32 4294901760, %v6584_v61 }
 0x1f6   : > { %4926 = vmatprep.mubr.f32.mxu1 %v6280_v6 }
 0x1f7   : > { %v3073_v33 = vsub.f32 %v6584_v61, %v3072_v31 }
 0x1f9   : > { %4927 = vmatmul.mubr.f32.gmra.mrb[24].mxu1 %v6276_v19  ;;  %v6562_v19 = vpack.c.bf16 %v2845_v51, %v2842_v41  ;;  %v3074_v6 = vand.u32 4294901760, %v3073_v33 }
 0x1fa   : > { %4929 = vmatprep.mubr.f32.mxu1 %v6303_v56  ;;  %v7057_v56 = vand.u32 4294901760, %v6596_v1 }
 0x1fb   : > { %5331 = vmatprep.subr.bf16.mxu0 %v6562_v19  ;;  %v6594_v2 = vpack.c.bf16 %v3074_v6, %v3067_v24  ;;  %v3088_v24 = vand.u32 4294901760, %v3087_v14 }
 0x1fc   : > { %5333 = vmatpush3.bf16.msra.mxu0 %v6562_v19  ;;  %v3094_v39 = vsub.f32 %v6596_v1, %v7057_v56 }
 0x1fd   : > { %4930 = vmatmul.mubr.f32.gmra.mrb[26].mxu1 %v6300_v62  ;;  %5335 = vmatprep.subr.bf16.mxu0 %v6572_v17  ;;  %v6598_v62 = vsub.f32 %v301_v5, %v2845_v51 }
 0x1fe   : > { %4932 = vmatprep.mubr.f32.mxu1 %v6324_v23  ;;  %v6609_v23 = vsub.f32 %v302_v47, %v2848_v58  ;;  %v3095_v53 = vand.u32 4294901760, %v3094_v39 }
 0x1ff   : > { %v7055_v45 = vand.u32 4294901760, %v6598_v62  ;;  %v6631_v59 = vpack.c.bf16 %v6598_v62, %v6596_v1 }
 0x200   : > { %5337 = vmatpush3.bf16.msra.mxu0 %v6572_v17  ;;  %v6635_v48 = vpack.c.bf16 %v6611_v4, %v6609_v23 }
 0x201   : > { %4933 = vmatmul.mubr.f32.gmra.mrb[28].mxu1 %v6318_v0  ;;  %5339 = vmatprep.subr.bf16.mxu0 %v6594_v2  ;;  %v3101_v0 = vsub.f32 %v6598_v62, %v7055_v45 }
 0x202   : > { %4935 = vmatprep.mubr.f32.mxu1 %v6350_v20  ;;  %v7050_v20 = vand.u32 4294901760, %v6609_v23 }
 0x204   : > { %v3108_v12 = vsub.f32 %v6609_v23, %v7050_v20 }
 0x205   : > { %4936 = vmatmul.mubr.f32.gmra.mrb[30].mxu1 %v6343_v3  ;;  %v3102_v3 = vand.u32 4294901760, %v3101_v0 }
 0x206   : > { %v3109_v27 = vand.u32 4294901760, %v3108_v12 }
 0x207   : > { %v6615_v57 = vpack.c.bf16 %v3102_v3, %v3095_v53 }
 0x208   : > { %v6623_v34 = vpack.c.bf16 %v3116_v29, %v3109_v27 }
 0x2bc   : > { %v4916_v60 = vpop.f32.mrb[16].mxu1 }
 0x2bd   : > { %v5450_v36 = vadd.f32 %v4916_v60, %v6650_v55  ;;  %v2665_v38 = vpop.f32.mrb[17].mxu1 }
 0x2be   : > { %v5451_v9 = vadd.f32 %v6650_v55, %v2665_v38 }
 0x2bf   : > { %v2760_v37 = vmax.f32 %v5450_v36, 0.0 }
 0x2c0   : > { %v2759_v22 = vmax.f32 %v5451_v9, 0.0  ;;  %v4919_v11 = vpop.f32.mrb[18].mxu1 }
 0x2c1   : > { %v2785_v40 = vsel %vm1528_vm1, %v2760_v37, 0  ;;  %v5452_v42 = vadd.f32 %v4919_v11, %v6650_v55  ;;  %v2677_v30 = vpop.f32.mrb[19].mxu1 }
 0x2c2   : > { %v6664_v15 = vand.u32 4294901760, %v2785_v40  ;;  %v2782_v32 = vsel %vm1528_vm1, %v2759_v22, 0  ;;  %v5453_v49 = vadd.f32 %v6650_v55, %v2677_v30 }
 0x2c3   : > { %v6668_v8 = vand.u32 4294901760, %v2782_v32  ;;  %v2762_v5 = vmax.f32 %v5452_v42, 0.0 }
 0x2c4   : > { %v6671_v41 = vsub.f32 %v2785_v40, %v6664_v15  ;;  %v2761_v51 = vmax.f32 %v5453_v49, 0.0  ;;  %v4922_v47 = vpop.f32.mrb[20].mxu1  ;;  %v5342_v40 = vpack.c.bf16 %v3088_v24, %v3081_v63 }
 0x2c5   : > { %v6674_v58 = vsub.f32 %v2782_v32, %v6668_v8  ;;  %v2791_v16 = vsel %vm1528_vm1, %v2762_v5, 0  ;;  %v5454_v28 = vadd.f32 %v4922_v47, %v6650_v55  ;;  %v2689_v33 = vpop.f32.mrb[21].mxu1 }
 0x2c6   : > { %v7063_v6 = vand.u32 4294901760, %v6671_v41  ;;  %v6679_v39 = vand.u32 4294901760, %v2791_v16  ;;  %v2788_v0 = vsel %vm1528_vm1, %v2761_v51, 0  ;;  %v5455_v53 = vadd.f32 %v6650_v55, %v2689_v33 }
 0x2c7   : > { %v6683_v3 = vand.u32 4294901760, %v2788_v0  ;;  %v2764_v12 = vmax.f32 %v5454_v28, 0.0  ;;  %v2904_v7 = vand.u32 4294901760, %v6674_v58  ;;  %v7084_v61 = vand.u32 4294901760, %v6671_v41 }
 0x2c8   : > { %v2915_v27 = vsub.f32 %v6671_v41, %v7063_v6  ;;  %v6690_v29 = vsub.f32 %v2791_v16, %v6679_v39  ;;  %v2763_v13 = vmax.f32 %v5455_v53, 0.0  ;;  %v4925_v52 = vpop.f32.mrb[22].mxu1 }
 0x2c9   : > { %v6693_v60 = vsub.f32 %v2788_v0, %v6683_v3  ;;  %v2797_v36 = vsel %vm1528_vm1, %v2764_v12, 0  ;;  %v5456_v38 = vadd.f32 %v4925_v52, %v6650_v55  ;;  %v2701_v9 = vpop.f32.mrb[23].mxu1  ;;  %v2905_v37 = vsub.f32 %v6674_v58, %v2904_v7 }
 0x2ca   : > { %v6700_v22 = vand.u32 4294901760, %v2797_v36  ;;  %v2794_v11 = vsel %vm1528_vm1, %v2763_v13, 0  ;;  %v5457_v35 = vadd.f32 %v6650_v55, %v2701_v9  ;;  %v2916_v49 = vand.u32 4294901760, %v2915_v27 }
 0x2cb   : > { %v6704_v42 = vand.u32 4294901760, %v2794_v11  ;;  %v2766_v30 = vmax.f32 %v5456_v38, 0.0  ;;  %v2906_v14 = vand.u32 4294901760, %v2905_v37  ;;  %v7059_v32 = vand.u32 4294901760, %v6693_v60 }
 0x2cc   : > { %v6708_v5 = vsub.f32 %v2797_v36, %v6700_v22  ;;  %v2765_v51 = vmax.f32 %v5457_v35, 0.0  ;;  %v4928_v47 = vpop.f32.mrb[24].mxu1  ;;  %v7054_v16 = vand.u32 4294901760, %v6690_v29 }
 0x2cd   : > { %v6712_v28 = vsub.f32 %v2794_v11, %v6704_v42  ;;  %v2803_v33 = vsel %vm1528_vm1, %v2766_v30, 0  ;;  %v5458_v63 = vadd.f32 %v4928_v47, %v6650_v55  ;;  %v2713_v24 = vpop.f32.mrb[25].mxu1  ;;  %4954 = vmatprep.mubr.f32.mxu0 %v2906_v14  ;;  %v2925_v0 = vsub.f32 %v6693_v60, %v7059_v32 }
 0x2ce   : > { %v6719_v53 = vand.u32 4294901760, %v2803_v33  ;;  %v2800_v12 = vsel %vm1528_vm1, %v2765_v51, 0  ;;  %v5459_v27 = vadd.f32 %v6650_v55, %v2713_v24  ;;  %4955 = vmatmul.mubr.f32.vlgmr.msra.gmra.mrb[16].mxu0 %v2916_v49  ;;  %v2935_v13 = vsub.f32 %v6690_v29, %v7054_v16 }
 0x2cf   : > { %v6726_v52 = vand.u32 4294901760, %v2800_v12  ;;  %v2768_v36 = vmax.f32 %v5458_v63, 0.0  ;;  %5341 = vmatpush3.bf16.msra.mxu0 %v6594_v2  ;;  %v2926_v38 = vand.u32 4294901760, %v2925_v0  ;;  %v7052_v9 = vand.u32 4294901760, %v6712_v28 }
 0x2d0   : > { %v6731_v37 = vsub.f32 %v2803_v33, %v6719_v53  ;;  %v2767_v11 = vmax.f32 %v5459_v27, 0.0  ;;  %v4931_v35 = vpop.f32.mrb[26].mxu1  ;;  %v2936_v30 = vand.u32 4294901760, %v2935_v13  ;;  %5343 = vmatprep.subr.bf16.mxu0 %v5342_v40  ;;  %v7051_v14 = vand.u32 4294901760, %v6708_v5 }
 0x2d1   : > { %v6735_v49 = vsub.f32 %v2800_v12, %v6726_v52  ;;  %v2809_v51 = vsel %vm1528_vm1, %v2768_v36, 0  ;;  %v5460_v47 = vadd.f32 %v4931_v35, %v6650_v55  ;;  %v2725_v2 = vpop.f32.mrb[27].mxu1  ;;  %4957 = vmatprep.mubr.f32.mxu0 %v2926_v38  ;;  %v2945_v33 = vsub.f32 %v6712_v28, %v7052_v9 }
 0x2d2   : > { %v6742_v63 = vand.u32 4294901760, %v2809_v51  ;;  %v2806_v24 = vsel %vm1528_vm1, %v2767_v11, 0  ;;  %v5461_v0 = vadd.f32 %v6650_v55, %v2725_v2  ;;  %4958 = vmatmul.mubr.f32.gmra.mrb[18].mxu0 %v2936_v30  ;;  %v2955_v12 = vsub.f32 %v6708_v5, %v7051_v14 }
 0x2d3   : > { %v6749_v27 = vand.u32 4294901760, %v2806_v24  ;;  %v2770_v13 = vmax.f32 %v5460_v47, 0.0  ;;  %v2946_v36 = vand.u32 4294901760, %v2945_v33  ;;  %5345 = vmatpush3.bf16.msra.mxu0 %v5342_v40  ;;  %v7053_v38 = vand.u32 4294901760, %v6735_v49 }
 0x2d4   : > { %v6753_v35 = vsub.f32 %v2809_v51, %v6742_v63  ;;  %v2769_v18 = vmax.f32 %v5461_v0, 0.0  ;;  %v4934_v20 = vpop.f32.mrb[28].mxu1  ;;  %v2956_v11 = vand.u32 4294901760, %v2955_v12  ;;  %v7056_v2 = vand.u32 4294901760, %v6731_v37  ;;  %5347 = vmatprep.subr.bf16.mxu0 %v6615_v57 }
 0x2d5   : > { %v6758_v30 = vsub.f32 %v2806_v24, %v6749_v27  ;;  %v2815_v14 = vsel %vm1528_vm1, %v2770_v13, 0  ;;  %v5462_v47 = vadd.f32 %v4934_v20, %v6650_v55  ;;  %v2737_v40 = vpop.f32.mrb[29].mxu1  ;;  %4960 = vmatprep.mubr.f32.mxu0 %v2946_v36  ;;  %v2965_v51 = vsub.f32 %v6735_v49, %v7053_v38 }
 0x2d6   : > { %v6765_v33 = vand.u32 4294901760, %v2815_v14  ;;  %v2812_v0 = vsel %vm1528_vm1, %v2769_v18, 0  ;;  %v5463_v12 = vadd.f32 %v6650_v55, %v2737_v40  ;;  %4961 = vmatmul.mubr.f32.gmra.mrb[20].mxu0 %v2956_v11  ;;  %v2975_v24 = vsub.f32 %v6731_v37, %v7056_v2 }
 0x2d7   : > { %v6772_v13 = vand.u32 4294901760, %v2812_v0  ;;  %v2772_v20 = vmax.f32 %v5462_v47, 0.0  ;;  %v2966_v9 = vand.u32 4294901760, %v2965_v51  ;;  %v7058_v36 = vand.u32 4294901760, %v6758_v30  ;;  %5349 = vmatpush3.bf16.msra.mxu0 %v6615_v57 }
 0x2d8   : > { %v6777_v38 = vsub.f32 %v2815_v14, %v6765_v33  ;;  %v2771_v16 = vmax.f32 %v5463_v12, 0.0  ;;  %v4937_v18 = vpop.f32.mrb[30].mxu1  ;;  %v2976_v45 = vand.u32 4294901760, %v2975_v24  ;;  %v7062_v11 = vand.u32 4294901760, %v6753_v35  ;;  %5351 = vmatprep.subr.bf16.mxu0 %v6623_v34 }
 0x2d9   : > { %v6782_v40 = vsub.f32 %v2812_v0, %v6772_v13  ;;  %v2821_v47 = vsel %vm1528_vm1, %v2772_v20, 0  ;;  %v5464_v51 = vadd.f32 %v4937_v18, %v6650_v55  ;;  %v2749_v2 = vpop.f32.mrb[31].mxu1  ;;  %4963 = vmatprep.mubr.f32.mxu0 %v2966_v9  ;;  %v2985_v57 = vsub.f32 %v6758_v30, %v7058_v36 }
 0x2da   : > { %v6789_v14 = vand.u32 4294901760, %v2821_v47  ;;  %v2818_v12 = vsel %vm1528_vm1, %v2771_v16, 0  ;;  %v5465_v24 = vadd.f32 %v6650_v55, %v2749_v2  ;;  %4964 = vmatmul.mubr.f32.gmra.mrb[22].mxu0 %v2976_v45  ;;  %v2995_v0 = vsub.f32 %v6753_v35, %v7062_v11 }
 0x2db   : > { %v6796_v20 = vand.u32 4294901760, %v2818_v12  ;;  %v2774_v18 = vmax.f32 %v5464_v51, 0.0  ;;  %v2986_v56 = vand.u32 4294901760, %v2985_v57  ;;  %v7060_v9 = vand.u32 4294901760, %v6782_v40  ;;  %5353 = vmatpush3.bf16.msra.mxu0 %v6623_v34 }
 0x2dc   : > { %v6801_v36 = vsub.f32 %v2821_v47, %v6789_v14  ;;  %v2773_v32 = vmax.f32 %v5465_v24, 0.0  ;;  %v2996_v16 = vand.u32 4294901760, %v2995_v0  ;;  %v7061_v55 = vand.u32 4294901760, %v6777_v38  ;;  %5355 = vmatprep.subr.bf16.mxu0 %v6627_v26 }
 0x2dd   : > { %v6806_v45 = vsub.f32 %v2818_v12, %v6796_v20  ;;  %v2827_v2 = vsel %vm1528_vm1, %v2774_v18, 0  ;;  %4966 = vmatprep.mubr.f32.mxu0 %v2986_v56  ;;  %v3005_v51 = vsub.f32 %v6782_v40, %v7060_v9  ;;  %v7097_v4 = vand.u32 4294901760, %v6782_v40 }
 0x2de   : > { %v6812_v34 = vand.u32 4294901760, %v2827_v2  ;;  %v2824_v47 = vsel %vm1528_vm1, %v2773_v32, 0  ;;  %4967 = vmatmul.mubr.f32.gmra.mrb[24].mxu0 %v2996_v16  ;;  %v3015_v57 = vsub.f32 %v6777_v38, %v7061_v55  ;;  %v7064_v24 = vand.u32 4294901760, %v6801_v36 }
 0x2df   : > { %v6819_v12 = vand.u32 4294901760, %v2824_v47  ;;  %v3006_v0 = vand.u32 4294901760, %v3005_v51  ;;  %v3024_v56 = vand.u32 4294901760, %v6806_v45 }
 0x2e0   : > { %v6823_v18 = vsub.f32 %v2827_v2, %v6812_v34  ;;  %v3016_v9 = vand.u32 4294901760, %v3015_v57  ;;  %v3035_v32 = vsub.f32 %v6801_v36, %v7064_v24 }
 0x2e1   : > { %v6829_v16 = vsub.f32 %v2824_v47, %v6819_v12  ;;  %4969 = vmatprep.mubr.f32.mxu0 %v3006_v0  ;;  %v3025_v55 = vsub.f32 %v6806_v45, %v3024_v56 }
 0x2e2   : > { %4970 = vmatmul.mubr.f32.gmra.mrb[26].mxu0 %v3016_v9  ;;  %v3054_v51 = vand.u32 4294901760, %v6823_v18  ;;  %v3036_v6 = vand.u32 4294901760, %v3035_v32  ;;  %v5358_v9 = vpack.c.bf16 %v6645_v54, %v6640_v43  ;;  %v7089_v43 = vand.u32 4294901760, %v6712_v28 }
 0x2e3   : > { %v3026_v11 = vand.u32 4294901760, %v3025_v55  ;;  %v3044_v2 = vand.u32 4294901760, %v6829_v16  ;;  %v7090_v54 = vand.u32 4294901760, %v6609_v23  ;;  %v7096_v23 = vand.u32 4294901760, %v6753_v35 }
 0x2e4   : > { %v3055_v57 = vsub.f32 %v6823_v18, %v3054_v51 }
 0x2e5   : > { %4972 = vmatprep.mubr.f32.mxu0 %v3026_v11  ;;  %v3045_v47 = vsub.f32 %v6829_v16, %v3044_v2  ;;  %v5398_v10 = vpack.c.bf16 %v7091_v50, %v7090_v54 }
 0x2e6   : > { %4973 = vmatmul.mubr.f32.gmra.mrb[28].mxu0 %v3036_v6  ;;  %v3056_v24 = vand.u32 4294901760, %v3055_v57  ;;  %v7095_v6 = vand.u32 4294901760, %v6758_v30 }
 0x2e7   : > { %v3046_v0 = vand.u32 4294901760, %v3045_v47 }
 0x2e9   : > { %4975 = vmatprep.mubr.f32.mxu0 %v3046_v0 }
 0x2ea   : > { %4976 = vmatmul.mubr.f32.gmra.mrb[30].mxu0 %v3056_v24 }
 0x2eb   : > { %4994 = vmatprep.mubr.f32.mxu0 %v6668_v8 }
 0x2ee   : > { %4995 = vmatmul.mubr.f32.vlgmr.msra.gmra.mrb[16].mxu0 %v6664_v15 }
 0x2ef   : > { %5357 = vmatpush3.bf16.msra.mxu0 %v6627_v26  ;;  %4997 = vmatprep.mubr.f32.mxu0 %v6683_v3  ;;  %v5386_v26 = vpack.c.bf16 %v3072_v31, %v3065_v21  ;;  %v7085_v21 = vand.u32 4294901760, %v6693_v60  ;;  %v7086_v31 = vand.u32 4294901760, %v6596_v1  ;;  %v7093_v1 = vand.u32 4294901760, %v6735_v49 }
 0x2f0   : > { %5359 = vmatprep.subr.bf16.mxu0 %v5358_v9 }
 0x2f2   : > { %4998 = vmatmul.mubr.f32.gmra.mrb[18].mxu0 %v6679_v39 }
 0x2f3   : > { %5000 = vmatprep.mubr.f32.mxu0 %v6704_v42  ;;  %5361 = vmatpush3.bf16.msra.mxu0 %v5358_v9 }
 0x2f4   : > { %5363 = vmatprep.subr.bf16.mxu0 %v6631_v59 }
 0x2f6   : > { %5001 = vmatmul.mubr.f32.gmra.mrb[20].mxu0 %v6700_v22 }
 0x2f7   : > { %5003 = vmatprep.mubr.f32.mxu0 %v6726_v52  ;;  %5365 = vmatpush3.bf16.msra.mxu0 %v6631_v59  ;;  %v7087_v59 = vand.u32 4294901760, %v6598_v62  ;;  %v7094_v62 = vand.u32 4294901760, %v6731_v37 }
 0x2f8   : > { %5367 = vmatprep.subr.bf16.mxu0 %v6635_v48 }
 0x2fa   : > { %5004 = vmatmul.mubr.f32.gmra.mrb[22].mxu0 %v6719_v53 }
 0x2fb   : > { %5006 = vmatprep.mubr.f32.mxu0 %v6749_v27  ;;  %5369 = vmatpush3.bf16.msra.mxu0 %v6635_v48  ;;  %v5394_v48 = vpack.c.bf16 %v7087_v59, %v7086_v31 }
 0x2fc   : > { %5371 = vmatprep.subr.bf16.mxu0 %v6434_v44 }
 0x2fe   : > { %5007 = vmatmul.mubr.f32.gmra.mrb[24].mxu0 %v6742_v63 }
 0x2ff   : > { %5009 = vmatprep.mubr.f32.mxu0 %v6772_v13 }
 0x302   : > { %5010 = vmatmul.mubr.f32.gmra.mrb[26].mxu0 %v6765_v33 }
 0x303   : > { %5012 = vmatprep.mubr.f32.mxu0 %v6796_v20 }
 0x306   : > { %5013 = vmatmul.mubr.f32.gmra.mrb[28].mxu0 %v6789_v14 }
 0x307   : > { %5015 = vmatprep.mubr.f32.mxu0 %v6819_v12 }
 0x30a   : > { %5016 = vmatmul.mubr.f32.gmra.mrb[30].mxu0 %v6812_v34 }
 0x30b   : > { %5034 = vmatprep.mubr.f32.mxu0 %v6674_v58  ;;  %v7088_v58 = vand.u32 4294901760, %v6690_v29 }
 0x30e   : > { %5035 = vmatmul.mubr.f32.vlgmr.msra.gmra.mrb[16].mxu0 %v6671_v41  ;;  %v7092_v41 = vand.u32 4294901760, %v6708_v5 }
 0x30f   : > { %5373 = vmatpush3.bf16.msra.mxu0 %v6434_v44  ;;  %5037 = vmatprep.mubr.f32.mxu0 %v6693_v60 }
 0x310   : > { %5375 = vmatprep.subr.bf16.mxu0 %v6441_v46 }
 0x312   : > { %5038 = vmatmul.mubr.f32.gmra.mrb[18].mxu0 %v6690_v29  ;;  %v7099_v29 = vand.u32 4294901760, %v6801_v36 }
 0x313   : > { %5040 = vmatprep.mubr.f32.mxu0 %v6712_v28  ;;  %5377 = vmatpush3.bf16.msra.mxu0 %v6441_v46 }
 0x314   : > { %5379 = vmatprep.subr.bf16.mxu0 %v6562_v19 }
 0x316   : > { %5041 = vmatmul.mubr.f32.gmra.mrb[20].mxu0 %v6708_v5 }
 0x317   : > { %5043 = vmatprep.mubr.f32.mxu0 %v6735_v49  ;;  %5381 = vmatpush3.bf16.msra.mxu0 %v6562_v19 }
 0x318   : > { %5383 = vmatprep.subr.bf16.mxu0 %v6572_v17 }
 0x31a   : > { %5044 = vmatmul.mubr.f32.gmra.mrb[22].mxu0 %v6731_v37 }
 0x31b   : > { %5046 = vmatprep.mubr.f32.mxu0 %v6758_v30  ;;  %5385 = vmatpush3.bf16.msra.mxu0 %v6572_v17 }
 0x31c   : > { %5387 = vmatprep.subr.bf16.mxu0 %v5386_v26 }
 0x31e   : > { %5047 = vmatmul.mubr.f32.gmra.mrb[24].mxu0 %v6753_v35 }
 0x31f   : > { %5049 = vmatprep.mubr.f32.mxu0 %v6782_v40 }
 0x322   : > { %5050 = vmatmul.mubr.f32.gmra.mrb[26].mxu0 %v6777_v38 }
 0x323   : > { %5052 = vmatprep.mubr.f32.mxu0 %v6806_v45 }
 0x326   : > { %5053 = vmatmul.mubr.f32.gmra.mrb[28].mxu0 %v6801_v36 }
 0x327   : > { %5055 = vmatprep.mubr.f32.mxu0 %v6829_v16 }
 0x32a   : > { %5056 = vmatmul.mubr.f32.gmra.mrb[30].mxu0 %v6823_v18 }
 0x32b   : > { %5074 = vmatprep.mubr.f32.mxu0 %v2904_v7  ;;  %v7098_v7 = vand.u32 4294901760, %v6777_v38 }
 0x32e   : > { %5075 = vmatmul.mubr.f32.vlgmr.msra.gmra.mrb[16].mxu0 %v7084_v61 }
 0x32f   : > { %5389 = vmatpush3.bf16.msra.mxu0 %v5386_v26  ;;  %5077 = vmatprep.mubr.f32.mxu0 %v7085_v21 }
 0x330   : > { %5391 = vmatprep.subr.bf16.mxu0 %v5390_v25 }
 0x332   : > { %5078 = vmatmul.mubr.f32.gmra.mrb[18].mxu0 %v7088_v58 }
 0x333   : > { %5080 = vmatprep.mubr.f32.mxu0 %v7089_v43  ;;  %5393 = vmatpush3.bf16.msra.mxu0 %v5390_v25 }
 0x334   : > { %5395 = vmatprep.subr.bf16.mxu0 %v5394_v48 }
 0x336   : > { %5081 = vmatmul.mubr.f32.gmra.mrb[20].mxu0 %v7092_v41 }
 0x337   : > { %5083 = vmatprep.mubr.f32.mxu0 %v7093_v1  ;;  %5397 = vmatpush3.bf16.msra.mxu0 %v5394_v48 }
 0x338   : > { %5399 = vmatprep.subr.bf16.mxu0 %v5398_v10 }
 0x33a   : > { %5084 = vmatmul.mubr.f32.gmra.mrb[22].mxu0 %v7094_v62 }
 0x33b   : > { %5086 = vmatprep.mubr.f32.mxu0 %v7095_v6  ;;  %5401 = vmatpush3.bf16.msra.mxu0 %v5398_v10 }
 0x33c   : > { %5403 = vmatprep.subr.bf16.mxu0 %v6434_v44 }
 0x33e   : > { %5087 = vmatmul.mubr.f32.gmra.mrb[24].mxu0 %v7096_v23 }
 0x33f   : > { %5089 = vmatprep.mubr.f32.mxu0 %v7097_v4 }
 0x342   : > { %5090 = vmatmul.mubr.f32.gmra.mrb[26].mxu0 %v7098_v7 }
 0x343   : > { %5092 = vmatprep.mubr.f32.mxu0 %v3024_v56 }
 0x346   : > { %5093 = vmatmul.mubr.f32.gmra.mrb[28].mxu0 %v7099_v29 }
 0x347   : > { %5095 = vmatprep.mubr.f32.mxu0 %v3044_v2 }
 0x34a   : > { %5096 = vmatmul.mubr.f32.gmra.mrb[30].mxu0 %v3054_v51 }
 0x34b   : > { %5114 = vmatprep.mubr.f32.mxu0 %v6668_v8 }
 0x34e   : > { %5115 = vmatmul.mubr.f32.vlgmr.msra.gmra.mrb[16].mxu0 %v6664_v15 }
 0x34f   : > { %5405 = vmatpush3.bf16.msra.mxu0 %v6434_v44  ;;  %5117 = vmatprep.mubr.f32.mxu0 %v6683_v3  ;;  %v4095_v44 = vld [vmem:[%s7028_s6] ss:$0 sm:$0xff] }
 0x350   : > { %5407 = vmatprep.subr.bf16.mxu0 %v6441_v46 }
 0x352   : > { %5118 = vmatmul.mubr.f32.gmra.mrb[18].mxu0 %v6679_v39 }
 0x353   : > { %5120 = vmatprep.mubr.f32.mxu0 %v6704_v42  ;;  %5409 = vmatpush3.bf16.msra.mxu0 %v6441_v46 }
 0x354   : > { %5411 = vmatprep.subr.bf16.mxu0 %v6562_v19 }
 0x356   : > { %5121 = vmatmul.mubr.f32.gmra.mrb[20].mxu0 %v6700_v22 }
 0x357   : > { %5123 = vmatprep.mubr.f32.mxu0 %v6726_v52  ;;  %5413 = vmatpush3.bf16.msra.mxu0 %v6562_v19 }
 0x358   : > { %5415 = vmatprep.subr.bf16.mxu0 %v6572_v17 }
 0x35a   : > { %5124 = vmatmul.mubr.f32.gmra.mrb[22].mxu0 %v6719_v53 }
 0x35b   : > { %5126 = vmatprep.mubr.f32.mxu0 %v6749_v27  ;;  %5417 = vmatpush3.bf16.msra.mxu0 %v6572_v17 }
 0x35e   : > { %5127 = vmatmul.mubr.f32.gmra.mrb[24].mxu0 %v6742_v63 }
 0x35f   : > { %5129 = vmatprep.mubr.f32.mxu0 %v6772_v13 }
 0x362   : > { %5130 = vmatmul.mubr.f32.gmra.mrb[26].mxu0 %v6765_v33 }
 0x363   : > { %5132 = vmatprep.mubr.f32.mxu0 %v6796_v20 }
 0x366   : > { %5133 = vmatmul.mubr.f32.gmra.mrb[28].mxu0 %v6789_v14 }
 0x367   : > { %5135 = vmatprep.mubr.f32.mxu0 %v6819_v12 }
 0x36a   : > { %5136 = vmatmul.mubr.f32.gmra.mrb[30].mxu0 %v6812_v34 }
 0x36b   : > { %5154 = vmatprep.mubr.f32.mxu0 %v6668_v8 }
 0x36e   : > { %5155 = vmatmul.mubr.f32.vlgmr.msra.gmra.mrb[16].mxu0 %v6664_v15 }
 0x36f   : > { %5157 = vmatprep.mubr.f32.mxu0 %v6683_v3 }
 0x372   : > { %5158 = vmatmul.mubr.f32.gmra.mrb[18].mxu0 %v6679_v39 }
 0x373   : > { %5160 = vmatprep.mubr.f32.mxu0 %v6704_v42 }
 0x376   : > { %5161 = vmatmul.mubr.f32.gmra.mrb[20].mxu0 %v6700_v22 }
 0x377   : > { %5163 = vmatprep.mubr.f32.mxu0 %v6726_v52 }
 0x37a   : > { %5164 = vmatmul.mubr.f32.gmra.mrb[22].mxu0 %v6719_v53 }
 0x37b   : > { %5166 = vmatprep.mubr.f32.mxu0 %v6749_v27 }
 0x37e   : > { %5167 = vmatmul.mubr.f32.gmra.mrb[24].mxu0 %v6742_v63 }
 0x37f   : > { %5169 = vmatprep.mubr.f32.mxu0 %v6772_v13 }
 0x382   : > { %5170 = vmatmul.mubr.f32.gmra.mrb[26].mxu0 %v6765_v33 }
 0x383   : > { %5172 = vmatprep.mubr.f32.mxu0 %v6796_v20 }
 0x386   : > { %5173 = vmatmul.mubr.f32.gmra.mrb[28].mxu0 %v6789_v14 }
 0x387   : > { %5175 = vmatprep.mubr.f32.mxu0 %v6819_v12 }
 0x38a   : > { %5176 = vmatmul.mubr.f32.gmra.mrb[30].mxu0 %v6812_v34 }
 0x441   : > { %v5156_v46 = vpop.f32.mrb[16].mxu0 }
 0x442   : > { %v5466_v19 = vadd.f32 %v5156_v46, %v4095_v44  ;;  %v3917_v17 = vpop.f32.mrb[17].mxu0 }
 0x443   : > { %v5467_v15 = vadd.f32 %v4095_v44, %v3917_v17 }
 0x444   : > { %4013 = vst.msk [vmem:[%s6985_s16 + $0x8] sm:$0xff] %vm4011_vm2, %v5466_v19 }
 0x445   : > { %4012 = vst.msk [vmem:[%s6985_s16] sm:$0xff] %vm4011_vm2, %v5467_v15  ;;  %v5159_v8 = vpop.f32.mrb[18].mxu0 }
 0x446   : > { %v5468_v39 = vadd.f32 %v5159_v8, %v4095_v44  ;;  %v3929_v3 = vpop.f32.mrb[19].mxu0 }
 0x447   : > { %v5469_v60 = vadd.f32 %v4095_v44, %v3929_v3 }
 0x448   : > { %4015 = vst.msk [vmem:[%s6985_s16 + $0x18] sm:$0xff] %vm4011_vm2, %v5468_v39 }
 0x449   : > { %4014 = vst.msk [vmem:[%s6985_s16 + $0x10] sm:$0xff] %vm4011_vm2, %v5469_v60  ;;  %v5162_v22 = vpop.f32.mrb[20].mxu0 }
 0x44a   : > { %v5470_v42 = vadd.f32 %v5162_v22, %v4095_v44  ;;  %v3941_v5 = vpop.f32.mrb[21].mxu0 }
 0x44b   : > { %v5471_v28 = vadd.f32 %v4095_v44, %v3941_v5 }
 0x44c   : > { %4017 = vst.msk [vmem:[%s6985_s16 + $0x28] sm:$0xff] %vm4011_vm2, %v5470_v42 }
 0x44d   : > { %4016 = vst.msk [vmem:[%s6985_s16 + $0x20] sm:$0xff] %vm4011_vm2, %v5471_v28  ;;  %v5165_v53 = vpop.f32.mrb[22].mxu0 }
 0x44e   : > { %v5472_v52 = vadd.f32 %v5165_v53, %v4095_v44  ;;  %v3953_v37 = vpop.f32.mrb[23].mxu0 }
 0x44f   : > { %v5473_v49 = vadd.f32 %v4095_v44, %v3953_v37 }
 0x450   : > { %4019 = vst.msk [vmem:[%s6985_s16 + $0x38] sm:$0xff] %vm4011_vm2, %v5472_v52 }
 0x451   : > { %4018 = vst.msk [vmem:[%s6985_s16 + $0x30] sm:$0xff] %vm4011_vm2, %v5473_v49  ;;  %v5168_v63 = vpop.f32.mrb[24].mxu0 }
 0x452   : > { %v5474_v27 = vadd.f32 %v5168_v63, %v4095_v44  ;;  %v3965_v38 = vpop.f32.mrb[25].mxu0 }
 0x453   : > { %v5475_v35 = vadd.f32 %v4095_v44, %v3965_v38 }
 0x454   : > { %4021 = vst.msk [vmem:[%s6985_s16 + $0x48] sm:$0xff] %vm4011_vm2, %v5474_v27 }
 0x455   : > { %4020 = vst.msk [vmem:[%s6985_s16 + $0x40] sm:$0xff] %vm4011_vm2, %v5475_v35  ;;  %v5171_v30 = vpop.f32.mrb[26].mxu0 }
 0x456   : > { %v5476_v33 = vadd.f32 %v5171_v30, %v4095_v44  ;;  %v3977_v13 = vpop.f32.mrb[27].mxu0 }
 0x457   : > { %v5477_v36 = vadd.f32 %v4095_v44, %v3977_v13 }
 0x458   : > { %4023 = vst.msk [vmem:[%s6985_s16 + $0x58] sm:$0xff] %vm4011_vm2, %v5476_v33 }
 0x459   : > { %4022 = vst.msk [vmem:[%s6985_s16 + $0x50] sm:$0xff] %vm4011_vm2, %v5477_v36  ;;  %v5174_v11 = vpop.f32.mrb[28].mxu0 }
 0x45a   : > { %v5478_v40 = vadd.f32 %v5174_v11, %v4095_v44  ;;  %v3989_v14 = vpop.f32.mrb[29].mxu0 }
 0x45b   : > { %v5479_v20 = vadd.f32 %v4095_v44, %v3989_v14 }
 0x45c   : > { %4025 = vst.msk [vmem:[%s6985_s16 + $0x68] sm:$0xff] %vm4011_vm2, %v5478_v40 }
 0x45d   : > { %4024 = vst.msk [vmem:[%s6985_s16 + $0x60] sm:$0xff] %vm4011_vm2, %v5479_v20  ;;  %v5177_v55 = vpop.f32.mrb[30].mxu0 }
 0x45e   : > { %v5480_v45 = vadd.f32 %v5177_v55, %v4095_v44  ;;  %v4001_v34 = vpop.f32.mrb[31].mxu0 }
 0x45f   : > { %v5481_v24 = vadd.f32 %v4095_v44, %v4001_v34 }
 0x460   : > { %4027 = vst.msk [vmem:[%s6985_s16 + $0x78] sm:$0xff] %vm4011_vm2, %v5480_v45 }
 0x461   : > { %4026 = vst.msk [vmem:[%s6985_s16 + $0x70] sm:$0xff] %vm4011_vm2, %v5481_v24 }
 0x462 PF: > { %s17_s24 = sadd.s32 1, %s5720_s24  }
 0x463   : > { %p14_p4 = scmp.ge.s32.totalorder %s17_s24, 4  }
 0x465   :  { %16 = sbr.rel (!%p14_p4) target bundleno = 1 (0x1), region = 78 }

</bundles_post_ra>
